<compile_context>
chip_gen: v5e
topology: v5e:2x2
jax: 0.10.0
libtpu: 0.0.40
codegen_flags: <defaults>
</compile_context>

<pallas_src>
import functools

import numpy as np

import jax
import jax.numpy as jnp
from jax.experimental import pallas as pl
from jax.experimental.pallas import tpu as pltpu


# ----------------------------------------------------------------------------
# helpers
# ----------------------------------------------------------------------------
def _layernorm(x, gamma, beta, eps=1e-5):
    # x: (L, D); gamma/beta: (1, D)
    mean = jnp.mean(x, axis=-1, keepdims=True)
    var = jnp.mean((x - mean) ** 2, axis=-1, keepdims=True)
    return (x - mean) * jax.lax.rsqrt(var + eps) * gamma + beta


def _full_spec(shape):
    zeros = (0,) * len(shape)
    return pl.BlockSpec(shape, lambda b, _z=zeros: _z)


class ParamLayout:
    """Packs a dict of small 2-D params into one (rows, cols) f32 array.

    Row offsets of the matrix blocks are kept sublane (8) aligned; the 1-row
    bias / LayerNorm params share a trailing tail block.
    """

    def __init__(self):
        self._entries = {}          # name -> (row0, rows, cols)
        self._rows = 0
        self._cols = 0

    def add(self, name, rows, cols):
        self._entries[name] = (self._rows, rows, cols)
        self._rows += rows
        self._cols = max(self._cols, cols)

    def finalize(self):
        self._rows = ((self._rows + 7) // 8) * 8   # pad rows to multiple of 8
        return self

    @property
    def shape(self):
        return (self._rows, self._cols)

    def pack(self, params):
        buf = np.zeros(self.shape, np.float32)
        for name, (r0, rows, cols) in self._entries.items():
            buf[r0:r0 + rows, :cols] = np.asarray(
                params[name], np.float32).reshape(rows, cols)
        return jnp.asarray(buf)

    def get(self, packed_value, name):
        r0, rows, cols = self._entries[name]
        return packed_value[r0:r0 + rows, :cols]


def make_mha_layout(input_dim, d_model, d_k, d_v, n_head):
    lay = ParamLayout()
    lay.add("w_q", input_dim, n_head * d_k)
    lay.add("w_k", input_dim, n_head * d_k)
    lay.add("w_v", input_dim, n_head * d_v)
    lay.add("w_fc1", n_head * d_v, d_model)
    lay.add("w_fc2", n_head * d_v, d_model)
    for nm in ("ln1_g", "ln1_b", "ln2_g", "ln2_b", "ln3_g", "ln3_b"):
        lay.add(nm, 1, input_dim)
    return lay.finalize()


def make_pff_layout(d_in, d_mid, d_out):
    lay = ParamLayout()
    lay.add("w1", d_in, d_mid)
    lay.add("w2", d_mid, d_out)
    lay.add("b1", 1, d_mid)
    lay.add("b2", 1, d_out)
    lay.add("ln_g", 1, d_out)
    lay.add("ln_b", 1, d_out)
    return lay.finalize()


def _combined_mask(mask, diag_mask_flag):
    """Host-side: combined = 1 - ((1 - diag_mask + mask) > 0), as in the reference."""
    _, Lq, Lk = mask.shape
    diag = jnp.ones((Lq, Lk), jnp.float32)
    if diag_mask_flag:
        diag = diag - jnp.eye(Lq, Lk, dtype=jnp.float32)
    return 1.0 - ((1.0 - diag[None, :, :] + mask.astype(jnp.float32)) > 0.0
                  ).astype(jnp.float32)


# ----------------------------------------------------------------------------
# in-kernel building blocks
# ----------------------------------------------------------------------------
def _mha_branch(q, kv, cmask, p, layout, *, n_head, d_k, d_v):
    """MultiHeadAttentionDi(static_flag=True) for one batch element.

    q: (Lq, Din); kv: (Lk, Din) (k == v in OnlyCrossAttention);
    cmask: (Lq, Lk) precomputed combined 0/1 mask.
    Returns (dyn (Lq, d_model), stat (Lk, d_model), attn (Lq, n_head*Lk)).
    """
    g = lambda name: layout.get(p, name)

    q_ln = _layernorm(q, g("ln1_g"), g("ln1_b"))
    k_ln = _layernorm(kv, g("ln2_g"), g("ln2_b"))
    v_ln = _layernorm(kv, g("ln3_g"), g("ln3_b"))

    qp = jnp.dot(q_ln, g("w_q"), preferred_element_type=jnp.float32)  # (Lq, H*dk)
    kp = jnp.dot(k_ln, g("w_k"), preferred_element_type=jnp.float32)  # (Lk, H*dk)
    vp = jnp.dot(v_ln, g("w_v"), preferred_element_type=jnp.float32)  # (Lk, H*dv)

    w_fc1 = g("w_fc1")
    inv_temp = 1.0 / (float(d_k) ** 0.5)

    dyn = None
    attn_heads = []
    for h in range(n_head):
        qh = qp[:, h * d_k:(h + 1) * d_k]
        kh = kp[:, h * d_k:(h + 1) * d_k]
        vh = vp[:, h * d_v:(h + 1) * d_v]

        scores = jnp.dot(qh, kh.T, preferred_element_type=jnp.float32) * inv_temp
        masked = scores * cmask
        m = jnp.max(masked, axis=-1, keepdims=True)
        e = jnp.exp(masked - m)
        attn = e * pl.reciprocal(jnp.sum(e, axis=-1, keepdims=True), approx=True)
        attn = attn * cmask
        attn = attn * pl.reciprocal(
            jnp.sum(attn, axis=-1, keepdims=True) + 1e-13, approx=True)
        attn_heads.append(attn)

        # Accumulate fc1(concat heads) head by head: attn_h @ v_h @ W_fc1[h*dv:(h+1)*dv]
        head_out = jnp.dot(
            jnp.dot(attn, vh, preferred_element_type=jnp.float32),
            w_fc1[h * d_v:(h + 1) * d_v, :], preferred_element_type=jnp.float32)
        dyn = head_out if dyn is None else dyn + head_out

    stat = jnp.dot(vp, g("w_fc2"), preferred_element_type=jnp.float32)   # (Lk, dm)
    attn_slab = jnp.concatenate(attn_heads, axis=-1)                     # (Lq, H*Lk)
    return dyn, stat, attn_slab


def _pff_branch(x, npm, p, layout, *, residual, apply_ln):
    """PositionwiseFeedForward (+ surrounding non_pad_mask multiplications)."""
    g = lambda name: layout.get(p, name)
    xm = x * npm
    h = jnp.tanh(jnp.dot(xm, g("w1"), preferred_element_type=jnp.float32) + g("b1"))
    out = jnp.dot(h, g("w2"), preferred_element_type=jnp.float32) + g("b2")
    if residual:
        out = out + xm
    if apply_ln:
        out = _layernorm(out, g("ln_g"), g("ln_b"))
    return out * npm


# ----------------------------------------------------------------------------
# the single fused kernel (per-batch grid step)
# ----------------------------------------------------------------------------
def _fused_cross_attention_kernel(
        d1_ref, d2_ref, s1_ref, s2_ref,
        cmu_ref, cmv_ref, npm1_ref, npm2_ref,
        p_attn_u_ref, p_attn_v_ref,
        p_pff_u1_ref, p_pff_u2_ref, p_pff_v1_ref, p_pff_v2_ref,
        out_d1_ref, out_s1_ref, out_d2_ref, out_s2_ref,
        attn_u_ref, attn_v_ref,
        *, n_head, d_k, d_v, mha_layout, pff1_layout, pff2_layout):
    npm1 = npm1_ref[0]                     # (L1, 1)
    npm2 = npm2_ref[0]                     # (L2, 1)

    # --- branch U: cross_attn_u(dynamic_1, static_2, static_2, mask1) ---
    dyn2u, stat2, attn_u = _mha_branch(
        d1_ref[0], s2_ref[0], cmu_ref[0], p_attn_u_ref[...], mha_layout,
        n_head=n_head, d_k=d_k, d_v=d_v)
    # --- branch V: cross_attn_v(dynamic_2, static_1, static_1, mask2) ---
    dyn2v, stat1, attn_v = _mha_branch(
        d2_ref[0], s1_ref[0], cmv_ref[0], p_attn_v_ref[...], mha_layout,
        n_head=n_head, d_k=d_k, d_v=d_v)

    attn_u_ref[0] = attn_u                 # (L1, H*L2) lane-dense slab
    attn_v_ref[0] = attn_v                 # (L2, H*L1)

    # --- fused PositionwiseFeedForward blocks ---
    out_d1_ref[0] = _pff_branch(dyn2u, npm1, p_pff_u1_ref[...], pff1_layout,
                                residual=True, apply_ln=True)
    out_s1_ref[0] = _pff_branch(stat1, npm1, p_pff_u2_ref[...], pff2_layout,
                                residual=False, apply_ln=True)
    out_d2_ref[0] = _pff_branch(dyn2v, npm2, p_pff_v1_ref[...], pff1_layout,
                                residual=True, apply_ln=True)
    out_s2_ref[0] = _pff_branch(stat2, npm2, p_pff_v2_ref[...], pff2_layout,
                                residual=False, apply_ln=True)


# ----------------------------------------------------------------------------
# forward builder
# ----------------------------------------------------------------------------
def build_forward(*, n_head, d_k, d_v, d_model, bottle_neck, diag_mask_flag):
    # The reference torch module is only shape-consistent when bottle_neck == d_model.
    assert bottle_neck == d_model

    mha_layout = make_mha_layout(bottle_neck, d_model, d_k, d_v, n_head)
    pff1_layout = make_pff_layout(d_model, d_model, d_model)        # pff_U1 / pff_V1
    pff2_layout = make_pff_layout(bottle_neck, d_model, d_model)    # pff_U2 / pff_V2

    kernel = functools.partial(
        _fused_cross_attention_kernel,
        n_head=n_head, d_k=d_k, d_v=d_v,
        mha_layout=mha_layout, pff1_layout=pff1_layout, pff2_layout=pff2_layout)

    @jax.jit
    def forward(packed, dynamic_1, dynamic_2, static_1, static_2,
                crs_attn_mask1, crs_attn_mask2,
                slf_attn_mask1, slf_attn_mask2,
                non_pad_mask1, non_pad_mask2):
        del slf_attn_mask1, slf_attn_mask2   # unused by the reference forward
        B, L1, BN = dynamic_1.shape
        _, L2, _ = dynamic_2.shape

        cm_u = _combined_mask(crs_attn_mask1, diag_mask_flag)   # (B, L1, L2)
        cm_v = _combined_mask(crs_attn_mask2, diag_mask_flag)   # (B, L2, L1)

        in_specs = [
            pl.BlockSpec((1, L1, BN), lambda b: (b, 0, 0)),      # dynamic_1
            pl.BlockSpec((1, L2, BN), lambda b: (b, 0, 0)),      # dynamic_2
            pl.BlockSpec((1, L1, BN), lambda b: (b, 0, 0)),      # static_1
            pl.BlockSpec((1, L2, BN), lambda b: (b, 0, 0)),      # static_2
            pl.BlockSpec((1, L1, L2), lambda b: (b, 0, 0)),      # combined mask U
            pl.BlockSpec((1, L2, L1), lambda b: (b, 0, 0)),      # combined mask V
            pl.BlockSpec((1, L1, 1), lambda b: (b, 0, 0)),       # non_pad_mask1
            pl.BlockSpec((1, L2, 1), lambda b: (b, 0, 0)),       # non_pad_mask2
            _full_spec(mha_layout.shape),                        # attn_u params
            _full_spec(mha_layout.shape),                        # attn_v params
            _full_spec(pff1_layout.shape),                       # pff_U1 params
            _full_spec(pff2_layout.shape),                       # pff_U2 params
            _full_spec(pff1_layout.shape),                       # pff_V1 params
            _full_spec(pff2_layout.shape),                       # pff_V2 params
        ]

        out_shapes = (
            jax.ShapeDtypeStruct((B, L1, d_model), jnp.float32),       # dynamic1
            jax.ShapeDtypeStruct((B, L1, d_model), jnp.float32),       # static1
            jax.ShapeDtypeStruct((B, L2, d_model), jnp.float32),       # dynamic2
            jax.ShapeDtypeStruct((B, L2, d_model), jnp.float32),       # static2
            jax.ShapeDtypeStruct((B, L1, n_head * L2), jnp.float32),   # attn_u slab
            jax.ShapeDtypeStruct((B, L2, n_head * L1), jnp.float32),   # attn_v slab
        )
        out_specs = (
            pl.BlockSpec((1, L1, d_model), lambda b: (b, 0, 0)),
            pl.BlockSpec((1, L1, d_model), lambda b: (b, 0, 0)),
            pl.BlockSpec((1, L2, d_model), lambda b: (b, 0, 0)),
            pl.BlockSpec((1, L2, d_model), lambda b: (b, 0, 0)),
            pl.BlockSpec((1, L1, n_head * L2), lambda b: (b, 0, 0)),
            pl.BlockSpec((1, L2, n_head * L1), lambda b: (b, 0, 0)),
        )

        dyn1, stat1, dyn2, stat2, attn_u_p, attn_v_p = pl.pallas_call(
            kernel,
            out_shape=out_shapes,
            grid=(B,),
            in_specs=in_specs,
            out_specs=out_specs,
            compiler_params=pltpu.CompilerParams(
                dimension_semantics=("parallel",)),
        )(dynamic_1, dynamic_2, static_1, static_2, cm_u, cm_v,
          non_pad_mask1, non_pad_mask2,
          packed["attn_u"], packed["attn_v"],
          packed["pff_U1"], packed["pff_U2"], packed["pff_V1"], packed["pff_V2"])

        # torch returns attn of shape (n_head * B, Lq, Lk), head-major (h*B + b).
        attn_u = jnp.transpose(attn_u_p.reshape(B, L1, n_head, L2),
                               (2, 0, 1, 3)).reshape(n_head * B, L1, L2)
        attn_v = jnp.transpose(attn_v_p.reshape(B, L2, n_head, L1),
                               (2, 0, 1, 3)).reshape(n_head * B, L2, L1)
        return dyn1, stat1, dyn2, stat2, [attn_u, attn_v]

    return forward, mha_layout, pff1_layout, pff2_layout


# ----------------------------------------------------------------------------
# Parameter construction (deterministic, synthetic)
# ----------------------------------------------------------------------------
def init_mha_params(key, *, input_dim, d_model, d_k, d_v, n_head):
    ks = jax.random.split(key, 9)
    std_qk = (2.0 / (d_model + d_k)) ** 0.5
    std_v = (2.0 / (d_model + d_v)) ** 0.5
    return {
        "ln1_g": 1.0 + 0.05 * jax.random.normal(ks[0], (1, input_dim), jnp.float32),
        "ln1_b": 0.05 * jax.random.normal(ks[1], (1, input_dim), jnp.float32),
        "ln2_g": 1.0 + 0.05 * jax.random.normal(ks[2], (1, input_dim), jnp.float32),
        "ln2_b": 0.05 * jax.random.normal(ks[3], (1, input_dim), jnp.float32),
        "ln3_g": 1.0 + 0.05 * jax.random.normal(ks[4], (1, input_dim), jnp.float32),
        "ln3_b": 0.05 * jax.random.normal(ks[5], (1, input_dim), jnp.float32),
        # stored pre-transposed: y = x @ W
        "w_q": std_qk * jax.random.normal(ks[6], (input_dim, n_head * d_k), jnp.float32),
        "w_k": std_qk * jax.random.normal(ks[7], (input_dim, n_head * d_k), jnp.float32),
        "w_v": std_v * jax.random.normal(ks[8], (input_dim, n_head * d_v), jnp.float32),
        "w_fc1": 0.1 * jax.random.normal(jax.random.fold_in(key, 100),
                                         (n_head * d_v, d_model), jnp.float32),
        "w_fc2": 0.1 * jax.random.normal(jax.random.fold_in(key, 101),
                                         (n_head * d_v, d_model), jnp.float32),
    }


def init_pff_params(key, *, d_in, d_mid, d_out):
    ks = jax.random.split(key, 6)
    return {
        # Conv1d(cin, cout, 1) == position-wise linear; stored (cin, cout); bias (1, cout)
        "w1": 0.1 * jax.random.normal(ks[0], (d_in, d_mid), jnp.float32),
        "b1": 0.05 * jax.random.normal(ks[1], (1, d_mid), jnp.float32),
        "w2": 0.1 * jax.random.normal(ks[2], (d_mid, d_out), jnp.float32),
        "b2": 0.05 * jax.random.normal(ks[3], (1, d_out), jnp.float32),
        "ln_g": 1.0 + 0.05 * jax.random.normal(ks[4], (1, d_out), jnp.float32),
        "ln_b": 0.05 * jax.random.normal(ks[5], (1, d_out), jnp.float32),
    }


# ----------------------------------------------------------------------------
# main
# ----------------------------------------------------------------------------
if __name__ == "__main__":
    # hyperparameters (bottle_neck == d_model, required for the torch module
    # itself to be shape-consistent)
    n_head, d_model, d_k, d_v = 2, 32, 16, 16
    bottle_neck = d_model
    diag_mask_flag = True
    B, L1, L2 = 2, 8, 16

    forward, mha_layout, pff1_layout, pff2_layout = build_forward(
        n_head=n_head, d_k=d_k, d_v=d_v, d_model=d_model,
        bottle_neck=bottle_neck, diag_mask_flag=diag_mask_flag)

    root = jax.random.PRNGKey(0)
    keys = jax.random.split(root, 16)

    raw_params = {
        "attn_u": init_mha_params(keys[0], input_dim=bottle_neck, d_model=d_model,
                                  d_k=d_k, d_v=d_v, n_head=n_head),
        "attn_v": init_mha_params(keys[1], input_dim=bottle_neck, d_model=d_model,
                                  d_k=d_k, d_v=d_v, n_head=n_head),
        "pff_U1": init_pff_params(keys[2], d_in=d_model, d_mid=d_model, d_out=d_model),
        "pff_U2": init_pff_params(keys[3], d_in=bottle_neck, d_mid=d_model, d_out=d_model),
        "pff_V1": init_pff_params(keys[4], d_in=d_model, d_mid=d_model, d_out=d_model),
        "pff_V2": init_pff_params(keys[5], d_in=bottle_neck, d_mid=d_model, d_out=d_model),
    }
    # pack the tiny per-module params once (one 2-D slab per sub-module)
    packed_params = {
        "attn_u": mha_layout.pack(raw_params["attn_u"]),
        "attn_v": mha_layout.pack(raw_params["attn_v"]),
        "pff_U1": pff1_layout.pack(raw_params["pff_U1"]),
        "pff_U2": pff2_layout.pack(raw_params["pff_U2"]),
        "pff_V1": pff1_layout.pack(raw_params["pff_V1"]),
        "pff_V2": pff2_layout.pack(raw_params["pff_V2"]),
    }

    dynamic_1 = jax.random.normal(keys[6], (B, L1, bottle_neck), jnp.float32)
    dynamic_2 = jax.random.normal(keys[7], (B, L2, bottle_neck), jnp.float32)
    static_1 = jax.random.normal(keys[8], (B, L1, bottle_neck), jnp.float32)
    static_2 = jax.random.normal(keys[9], (B, L2, bottle_neck), jnp.float32)

    crs_attn_mask1 = (jax.random.uniform(keys[10], (B, L1, L2)) < 0.2).astype(jnp.float32)
    crs_attn_mask2 = (jax.random.uniform(keys[11], (B, L2, L1)) < 0.2).astype(jnp.float32)
    slf_attn_mask1 = jnp.zeros((B, L1, L1), jnp.float32)  # unused by forward
    slf_attn_mask2 = jnp.zeros((B, L2, L2), jnp.float32)  # unused by forward
    non_pad_mask1 = (jax.random.uniform(keys[12], (B, L1, 1)) < 0.9).astype(jnp.float32)
    non_pad_mask2 = (jax.random.uniform(keys[13], (B, L2, 1)) < 0.9).astype(jnp.float32)

    outs = forward(
        packed_params,
        dynamic_1, dynamic_2, static_1, static_2,
        crs_attn_mask1, crs_attn_mask2,
        slf_attn_mask1, slf_attn_mask2,
        non_pad_mask1, non_pad_mask2,
    )

    dynamic1, static1, dynamic2, static2, (attn_u, attn_v) = outs
    jax.block_until_ready((dynamic1, static1, dynamic2, static2, attn_u, attn_v))

    assert dynamic1.shape == (B, L1, d_model)
    assert static1.shape == (B, L1, d_model)
    assert dynamic2.shape == (B, L2, d_model)
    assert static2.shape == (B, L2, d_model)
    assert attn_u.shape == (n_head * B, L1, L2)
    assert attn_v.shape == (n_head * B, L2, L1)

    print("KERNEL_OK")
</pallas_src>

<mosaic_0001>
module attributes {stable_mosaic.version = 11 : i64} {
  func.func @_fused_cross_attention_kernel(%arg0: i32, %arg1: memref<1x8x32xf32, #tpu.memory_space<vmem>>, %arg2: memref<1x16x32xf32, #tpu.memory_space<vmem>>, %arg3: memref<1x8x32xf32, #tpu.memory_space<vmem>>, %arg4: memref<1x16x32xf32, #tpu.memory_space<vmem>>, %arg5: memref<1x8x16xf32, #tpu.memory_space<vmem>>, %arg6: memref<1x16x8xf32, #tpu.memory_space<vmem>>, %arg7: memref<1x8x1xf32, #tpu.memory_space<vmem>>, %arg8: memref<1x16x1xf32, #tpu.memory_space<vmem>>, %arg9: memref<168x32xf32, #tpu.memory_space<vmem>>, %arg10: memref<168x32xf32, #tpu.memory_space<vmem>>, %arg11: memref<72x32xf32, #tpu.memory_space<vmem>>, %arg12: memref<72x32xf32, #tpu.memory_space<vmem>>, %arg13: memref<72x32xf32, #tpu.memory_space<vmem>>, %arg14: memref<72x32xf32, #tpu.memory_space<vmem>>, %arg15: memref<1x8x32xf32, #tpu.memory_space<vmem>>, %arg16: memref<1x8x32xf32, #tpu.memory_space<vmem>>, %arg17: memref<1x16x32xf32, #tpu.memory_space<vmem>>, %arg18: memref<1x16x32xf32, #tpu.memory_space<vmem>>, %arg19: memref<1x8x32xf32, #tpu.memory_space<vmem>>, %arg20: memref<1x16x16xf32, #tpu.memory_space<vmem>>) attributes {dimension_semantics = [#tpu.dimension_semantics<parallel>], iteration_bounds = array<i64: 2>, scalar_prefetch = 0 : i64, scratch_operands = 0 : i64, tpu.core_type = #tpu.core_type<tc>, window_params = [{transform_indices = @transform_0, window_bounds = array<i64: 1, 8, 32>}, {transform_indices = @transform_1, window_bounds = array<i64: 1, 16, 32>}, {transform_indices = @transform_2, window_bounds = array<i64: 1, 8, 32>}, {transform_indices = @transform_3, window_bounds = array<i64: 1, 16, 32>}, {transform_indices = @transform_4, window_bounds = array<i64: 1, 8, 16>}, {transform_indices = @transform_5, window_bounds = array<i64: 1, 16, 8>}, {transform_indices = @transform_6, window_bounds = array<i64: 1, 8, 1>}, {transform_indices = @transform_7, window_bounds = array<i64: 1, 16, 1>}, {pipeline_mode = #tpu.pipeline_mode<synchronous>, transform_indices = @transform_8, window_bounds = array<i64: 168, 32>}, {pipeline_mode = #tpu.pipeline_mode<synchronous>, transform_indices = @transform_9, window_bounds = array<i64: 168, 32>}, {pipeline_mode = #tpu.pipeline_mode<synchronous>, transform_indices = @transform_10, window_bounds = array<i64: 72, 32>}, {pipeline_mode = #tpu.pipeline_mode<synchronous>, transform_indices = @transform_11, window_bounds = array<i64: 72, 32>}, {pipeline_mode = #tpu.pipeline_mode<synchronous>, transform_indices = @transform_12, window_bounds = array<i64: 72, 32>}, {pipeline_mode = #tpu.pipeline_mode<synchronous>, transform_indices = @transform_13, window_bounds = array<i64: 72, 32>}, {transform_indices = @transform_14, window_bounds = array<i64: 1, 8, 32>}, {transform_indices = @transform_15, window_bounds = array<i64: 1, 8, 32>}, {transform_indices = @transform_16, window_bounds = array<i64: 1, 16, 32>}, {transform_indices = @transform_17, window_bounds = array<i64: 1, 16, 32>}, {transform_indices = @transform_18, window_bounds = array<i64: 1, 8, 32>}, {transform_indices = @transform_19, window_bounds = array<i64: 1, 16, 16>}]} {
    %c0 = arith.constant 0 : index
    %c0_0 = arith.constant 0 : index
    %c0_1 = arith.constant 0 : index
    %0 = vector.load %arg7[%c0, %c0_0, %c0_1] : memref<1x8x1xf32, #tpu.memory_space<vmem>>, vector<1x8x1xf32>
    %1 = vector.shape_cast %0 : vector<1x8x1xf32> to vector<8x1xf32>
    %c0_2 = arith.constant 0 : index
    %c0_3 = arith.constant 0 : index
    %c0_4 = arith.constant 0 : index
    %2 = vector.load %arg8[%c0_2, %c0_3, %c0_4] : memref<1x16x1xf32, #tpu.memory_space<vmem>>, vector<1x16x1xf32>
    %3 = vector.shape_cast %2 : vector<1x16x1xf32> to vector<16x1xf32>
    %c0_5 = arith.constant 0 : index
    %c0_6 = arith.constant 0 : index
    %c0_7 = arith.constant 0 : index
    %4 = vector.load %arg1[%c0_5, %c0_6, %c0_7] : memref<1x8x32xf32, #tpu.memory_space<vmem>>, vector<1x8x32xf32>
    %5 = vector.shape_cast %4 : vector<1x8x32xf32> to vector<8x32xf32>
    %c0_8 = arith.constant 0 : index
    %c0_9 = arith.constant 0 : index
    %c0_10 = arith.constant 0 : index
    %6 = vector.load %arg4[%c0_8, %c0_9, %c0_10] : memref<1x16x32xf32, #tpu.memory_space<vmem>>, vector<1x16x32xf32>
    %7 = vector.shape_cast %6 : vector<1x16x32xf32> to vector<16x32xf32>
    %c0_11 = arith.constant 0 : index
    %c0_12 = arith.constant 0 : index
    %c0_13 = arith.constant 0 : index
    %8 = vector.load %arg5[%c0_11, %c0_12, %c0_13] : memref<1x8x16xf32, #tpu.memory_space<vmem>>, vector<1x8x16xf32>
    %9 = vector.shape_cast %8 : vector<1x8x16xf32> to vector<8x16xf32>
    %c0_14 = arith.constant 0 : index
    %c0_15 = arith.constant 0 : index
    %10 = vector.load %arg9[%c0_14, %c0_15] : memref<168x32xf32, #tpu.memory_space<vmem>>, vector<168x32xf32>
    %11 = vector.extract_strided_slice %10 {offsets = [160, 0], sizes = [1, 32], strides = [1, 1]} : vector<168x32xf32> to vector<1x32xf32>
    %12 = vector.extract_strided_slice %10 {offsets = [161, 0], sizes = [1, 32], strides = [1, 1]} : vector<168x32xf32> to vector<1x32xf32>
    %cst = arith.constant dense<0.000000e+00> : vector<8xf32>
    %13 = vector.multi_reduction <add>, %5, %cst [1] : vector<8x32xf32> to vector<8xf32>
    %14 = vector.shape_cast %13 : vector<8xf32> to vector<8x1xf32>
    %cst_16 = arith.constant 3.200000e+01 : f32
    %15 = vector.broadcast %cst_16 : f32 to vector<8x1xf32>
    %16 = arith.divf %14, %15 : vector<8x1xf32>
    %17 = vector.broadcast %16 : vector<8x1xf32> to vector<8x32xf32>
    %18 = arith.subf %5, %17 : vector<8x32xf32>
    %19 = arith.mulf %18, %18 : vector<8x32xf32>
    %cst_17 = arith.constant dense<0.000000e+00> : vector<8xf32>
    %20 = vector.multi_reduction <add>, %19, %cst_17 [1] : vector<8x32xf32> to vector<8xf32>
    %21 = vector.shape_cast %20 : vector<8xf32> to vector<8x1xf32>
    %cst_18 = arith.constant 3.200000e+01 : f32
    %22 = vector.broadcast %cst_18 : f32 to vector<8x1xf32>
    %23 = arith.divf %21, %22 : vector<8x1xf32>
    %24 = vector.broadcast %16 : vector<8x1xf32> to vector<8x32xf32>
    %25 = arith.subf %5, %24 : vector<8x32xf32>
    %cst_19 = arith.constant 9.99999974E-6 : f32
    %26 = vector.broadcast %cst_19 : f32 to vector<8x1xf32>
    %27 = arith.addf %23, %26 : vector<8x1xf32>
    %28 = math.rsqrt %27 : vector<8x1xf32>
    %29 = vector.broadcast %28 : vector<8x1xf32> to vector<8x32xf32>
    %30 = arith.mulf %25, %29 : vector<8x32xf32>
    %31 = vector.broadcast %11 : vector<1x32xf32> to vector<8x32xf32>
    %32 = arith.mulf %30, %31 : vector<8x32xf32>
    %33 = vector.broadcast %12 : vector<1x32xf32> to vector<8x32xf32>
    %34 = arith.addf %32, %33 : vector<8x32xf32>
    %35 = vector.extract_strided_slice %10 {offsets = [162, 0], sizes = [1, 32], strides = [1, 1]} : vector<168x32xf32> to vector<1x32xf32>
    %36 = vector.extract_strided_slice %10 {offsets = [163, 0], sizes = [1, 32], strides = [1, 1]} : vector<168x32xf32> to vector<1x32xf32>
    %cst_20 = arith.constant dense<0.000000e+00> : vector<16xf32>
    %37 = vector.multi_reduction <add>, %7, %cst_20 [1] : vector<16x32xf32> to vector<16xf32>
    %38 = vector.shape_cast %37 : vector<16xf32> to vector<16x1xf32>
    %cst_21 = arith.constant 3.200000e+01 : f32
    %39 = vector.broadcast %cst_21 : f32 to vector<16x1xf32>
    %40 = arith.divf %38, %39 : vector<16x1xf32>
    %41 = vector.broadcast %40 : vector<16x1xf32> to vector<16x32xf32>
    %42 = arith.subf %7, %41 : vector<16x32xf32>
    %43 = arith.mulf %42, %42 : vector<16x32xf32>
    %cst_22 = arith.constant dense<0.000000e+00> : vector<16xf32>
    %44 = vector.multi_reduction <add>, %43, %cst_22 [1] : vector<16x32xf32> to vector<16xf32>
    %45 = vector.shape_cast %44 : vector<16xf32> to vector<16x1xf32>
    %cst_23 = arith.constant 3.200000e+01 : f32
    %46 = vector.broadcast %cst_23 : f32 to vector<16x1xf32>
    %47 = arith.divf %45, %46 : vector<16x1xf32>
    %48 = vector.broadcast %40 : vector<16x1xf32> to vector<16x32xf32>
    %49 = arith.subf %7, %48 : vector<16x32xf32>
    %cst_24 = arith.constant 9.99999974E-6 : f32
    %50 = vector.broadcast %cst_24 : f32 to vector<16x1xf32>
    %51 = arith.addf %47, %50 : vector<16x1xf32>
    %52 = math.rsqrt %51 : vector<16x1xf32>
    %53 = vector.broadcast %52 : vector<16x1xf32> to vector<16x32xf32>
    %54 = arith.mulf %49, %53 : vector<16x32xf32>
    %55 = vector.broadcast %35 : vector<1x32xf32> to vector<16x32xf32>
    %56 = arith.mulf %54, %55 : vector<16x32xf32>
    %57 = vector.broadcast %36 : vector<1x32xf32> to vector<16x32xf32>
    %58 = arith.addf %56, %57 : vector<16x32xf32>
    %59 = vector.extract_strided_slice %10 {offsets = [164, 0], sizes = [1, 32], strides = [1, 1]} : vector<168x32xf32> to vector<1x32xf32>
    %60 = vector.extract_strided_slice %10 {offsets = [165, 0], sizes = [1, 32], strides = [1, 1]} : vector<168x32xf32> to vector<1x32xf32>
    %cst_25 = arith.constant dense<0.000000e+00> : vector<16xf32>
    %61 = vector.multi_reduction <add>, %7, %cst_25 [1] : vector<16x32xf32> to vector<16xf32>
    %62 = vector.shape_cast %61 : vector<16xf32> to vector<16x1xf32>
    %cst_26 = arith.constant 3.200000e+01 : f32
    %63 = vector.broadcast %cst_26 : f32 to vector<16x1xf32>
    %64 = arith.divf %62, %63 : vector<16x1xf32>
    %65 = vector.broadcast %64 : vector<16x1xf32> to vector<16x32xf32>
    %66 = arith.subf %7, %65 : vector<16x32xf32>
    %67 = arith.mulf %66, %66 : vector<16x32xf32>
    %cst_27 = arith.constant dense<0.000000e+00> : vector<16xf32>
    %68 = vector.multi_reduction <add>, %67, %cst_27 [1] : vector<16x32xf32> to vector<16xf32>
    %69 = vector.shape_cast %68 : vector<16xf32> to vector<16x1xf32>
    %cst_28 = arith.constant 3.200000e+01 : f32
    %70 = vector.broadcast %cst_28 : f32 to vector<16x1xf32>
    %71 = arith.divf %69, %70 : vector<16x1xf32>
    %72 = vector.broadcast %64 : vector<16x1xf32> to vector<16x32xf32>
    %73 = arith.subf %7, %72 : vector<16x32xf32>
    %cst_29 = arith.constant 9.99999974E-6 : f32
    %74 = vector.broadcast %cst_29 : f32 to vector<16x1xf32>
    %75 = arith.addf %71, %74 : vector<16x1xf32>
    %76 = math.rsqrt %75 : vector<16x1xf32>
    %77 = vector.broadcast %76 : vector<16x1xf32> to vector<16x32xf32>
    %78 = arith.mulf %73, %77 : vector<16x32xf32>
    %79 = vector.broadcast %59 : vector<1x32xf32> to vector<16x32xf32>
    %80 = arith.mulf %78, %79 : vector<16x32xf32>
    %81 = vector.broadcast %60 : vector<1x32xf32> to vector<16x32xf32>
    %82 = arith.addf %80, %81 : vector<16x32xf32>
    %83 = vector.extract_strided_slice %10 {offsets = [0, 0], sizes = [32, 32], strides = [1, 1]} : vector<168x32xf32> to vector<32x32xf32>
    %cst_30 = arith.constant dense<0.000000e+00> : vector<8x32xf32>
    %84 = tpu.matmul %34, %83, %cst_30 {dimension_numbers = #tpu.dot_dimension_numbers<[1], [0], [0], [1], [0, 0, 1, 1], [], []>} : vector<8x32xf32>, vector<32x32xf32>, vector<8x32xf32> -> vector<8x32xf32>
    %85 = vector.extract_strided_slice %10 {offsets = [32, 0], sizes = [32, 32], strides = [1, 1]} : vector<168x32xf32> to vector<32x32xf32>
    %cst_31 = arith.constant dense<0.000000e+00> : vector<16x32xf32>
    %86 = tpu.matmul %58, %85, %cst_31 {dimension_numbers = #tpu.dot_dimension_numbers<[1], [0], [0], [1], [0, 0, 1, 1], [], []>} : vector<16x32xf32>, vector<32x32xf32>, vector<16x32xf32> -> vector<16x32xf32>
    %87 = vector.extract_strided_slice %10 {offsets = [64, 0], sizes = [32, 32], strides = [1, 1]} : vector<168x32xf32> to vector<32x32xf32>
    %cst_32 = arith.constant dense<0.000000e+00> : vector<16x32xf32>
    %88 = tpu.matmul %82, %87, %cst_32 {dimension_numbers = #tpu.dot_dimension_numbers<[1], [0], [0], [1], [0, 0, 1, 1], [], []>} : vector<16x32xf32>, vector<32x32xf32>, vector<16x32xf32> -> vector<16x32xf32>
    %89 = vector.extract_strided_slice %10 {offsets = [96, 0], sizes = [32, 32], strides = [1, 1]} : vector<168x32xf32> to vector<32x32xf32>
    %90 = vector.extract_strided_slice %84 {offsets = [0, 0], sizes = [8, 16], strides = [1, 1]} : vector<8x32xf32> to vector<8x16xf32>
    %91 = vector.extract_strided_slice %86 {offsets = [0, 0], sizes = [16, 16], strides = [1, 1]} : vector<16x32xf32> to vector<16x16xf32>
    %92 = vector.extract_strided_slice %88 {offsets = [0, 0], sizes = [16, 16], strides = [1, 1]} : vector<16x32xf32> to vector<16x16xf32>
    %93 = tpu.transpose %91, [1, 0] : vector<16x16xf32> -> vector<16x16xf32>
    %cst_33 = arith.constant dense<0.000000e+00> : vector<8x16xf32>
    %94 = tpu.matmul %90, %93, %cst_33 {dimension_numbers = #tpu.dot_dimension_numbers<[1], [0], [0], [1], [0, 0, 1, 1], [], []>} : vector<8x16xf32>, vector<16x16xf32>, vector<8x16xf32> -> vector<8x16xf32>
    %cst_34 = arith.constant 2.500000e-01 : f32
    %95 = vector.broadcast %cst_34 : f32 to vector<8x16xf32>
    %96 = arith.mulf %94, %95 : vector<8x16xf32>
    %97 = arith.mulf %96, %9 : vector<8x16xf32>
    %cst_35 = arith.constant dense<0xFF800000> : vector<8xf32>
    %98 = vector.multi_reduction <maximumf>, %97, %cst_35 [1] : vector<8x16xf32> to vector<8xf32>
    %99 = vector.shape_cast %98 : vector<8xf32> to vector<8x1xf32>
    %100 = vector.broadcast %99 : vector<8x1xf32> to vector<8x16xf32>
    %101 = arith.subf %97, %100 : vector<8x16xf32>
    %102 = math.exp %101 : vector<8x16xf32>
    %cst_36 = arith.constant dense<0.000000e+00> : vector<8xf32>
    %103 = vector.multi_reduction <add>, %102, %cst_36 [1] : vector<8x16xf32> to vector<8xf32>
    %104 = vector.shape_cast %103 : vector<8xf32> to vector<8x1xf32>
    %105 = tpu.reciprocal %104 {approx = true} : vector<8x1xf32> -> vector<8x1xf32>
    %106 = vector.broadcast %105 : vector<8x1xf32> to vector<8x16xf32>
    %107 = arith.mulf %102, %106 : vector<8x16xf32>
    %108 = arith.mulf %107, %9 : vector<8x16xf32>
    %cst_37 = arith.constant dense<0.000000e+00> : vector<8xf32>
    %109 = vector.multi_reduction <add>, %108, %cst_37 [1] : vector<8x16xf32> to vector<8xf32>
    %110 = vector.shape_cast %109 : vector<8xf32> to vector<8x1xf32>
    %cst_38 = arith.constant 9.99999982E-14 : f32
    %111 = vector.broadcast %cst_38 : f32 to vector<8x1xf32>
    %112 = arith.addf %110, %111 : vector<8x1xf32>
    %113 = tpu.reciprocal %112 {approx = true} : vector<8x1xf32> -> vector<8x1xf32>
    %114 = vector.broadcast %113 : vector<8x1xf32> to vector<8x16xf32>
    %115 = arith.mulf %108, %114 : vector<8x16xf32>
    %cst_39 = arith.constant dense<0.000000e+00> : vector<8x16xf32>
    %116 = tpu.matmul %115, %92, %cst_39 {dimension_numbers = #tpu.dot_dimension_numbers<[1], [0], [0], [1], [0, 0, 1, 1], [], []>} : vector<8x16xf32>, vector<16x16xf32>, vector<8x16xf32> -> vector<8x16xf32>
    %117 = vector.extract_strided_slice %89 {offsets = [0, 0], sizes = [16, 32], strides = [1, 1]} : vector<32x32xf32> to vector<16x32xf32>
    %cst_40 = arith.constant dense<0.000000e+00> : vector<8x32xf32>
    %118 = tpu.matmul %116, %117, %cst_40 {dimension_numbers = #tpu.dot_dimension_numbers<[1], [0], [0], [1], [0, 0, 1, 1], [], []>} : vector<8x16xf32>, vector<16x32xf32>, vector<8x32xf32> -> vector<8x32xf32>
    %119 = vector.extract_strided_slice %84 {offsets = [0, 16], sizes = [8, 16], strides = [1, 1]} : vector<8x32xf32> to vector<8x16xf32>
    %120 = vector.extract_strided_slice %86 {offsets = [0, 16], sizes = [16, 16], strides = [1, 1]} : vector<16x32xf32> to vector<16x16xf32>
    %121 = vector.extract_strided_slice %88 {offsets = [0, 16], sizes = [16, 16], strides = [1, 1]} : vector<16x32xf32> to vector<16x16xf32>
    %122 = tpu.transpose %120, [1, 0] : vector<16x16xf32> -> vector<16x16xf32>
    %cst_41 = arith.constant dense<0.000000e+00> : vector<8x16xf32>
    %123 = tpu.matmul %119, %122, %cst_41 {dimension_numbers = #tpu.dot_dimension_numbers<[1], [0], [0], [1], [0, 0, 1, 1], [], []>} : vector<8x16xf32>, vector<16x16xf32>, vector<8x16xf32> -> vector<8x16xf32>
    %cst_42 = arith.constant 2.500000e-01 : f32
    %124 = vector.broadcast %cst_42 : f32 to vector<8x16xf32>
    %125 = arith.mulf %123, %124 : vector<8x16xf32>
    %126 = arith.mulf %125, %9 : vector<8x16xf32>
    %cst_43 = arith.constant dense<0xFF800000> : vector<8xf32>
    %127 = vector.multi_reduction <maximumf>, %126, %cst_43 [1] : vector<8x16xf32> to vector<8xf32>
    %128 = vector.shape_cast %127 : vector<8xf32> to vector<8x1xf32>
    %129 = vector.broadcast %128 : vector<8x1xf32> to vector<8x16xf32>
    %130 = arith.subf %126, %129 : vector<8x16xf32>
    %131 = math.exp %130 : vector<8x16xf32>
    %cst_44 = arith.constant dense<0.000000e+00> : vector<8xf32>
    %132 = vector.multi_reduction <add>, %131, %cst_44 [1] : vector<8x16xf32> to vector<8xf32>
    %133 = vector.shape_cast %132 : vector<8xf32> to vector<8x1xf32>
    %134 = tpu.reciprocal %133 {approx = true} : vector<8x1xf32> -> vector<8x1xf32>
    %135 = vector.broadcast %134 : vector<8x1xf32> to vector<8x16xf32>
    %136 = arith.mulf %131, %135 : vector<8x16xf32>
    %137 = arith.mulf %136, %9 : vector<8x16xf32>
    %cst_45 = arith.constant dense<0.000000e+00> : vector<8xf32>
    %138 = vector.multi_reduction <add>, %137, %cst_45 [1] : vector<8x16xf32> to vector<8xf32>
    %139 = vector.shape_cast %138 : vector<8xf32> to vector<8x1xf32>
    %cst_46 = arith.constant 9.99999982E-14 : f32
    %140 = vector.broadcast %cst_46 : f32 to vector<8x1xf32>
    %141 = arith.addf %139, %140 : vector<8x1xf32>
    %142 = tpu.reciprocal %141 {approx = true} : vector<8x1xf32> -> vector<8x1xf32>
    %143 = vector.broadcast %142 : vector<8x1xf32> to vector<8x16xf32>
    %144 = arith.mulf %137, %143 : vector<8x16xf32>
    %cst_47 = arith.constant dense<0.000000e+00> : vector<8x16xf32>
    %145 = tpu.matmul %144, %121, %cst_47 {dimension_numbers = #tpu.dot_dimension_numbers<[1], [0], [0], [1], [0, 0, 1, 1], [], []>} : vector<8x16xf32>, vector<16x16xf32>, vector<8x16xf32> -> vector<8x16xf32>
    %146 = vector.extract_strided_slice %89 {offsets = [16, 0], sizes = [16, 32], strides = [1, 1]} : vector<32x32xf32> to vector<16x32xf32>
    %cst_48 = arith.constant dense<0.000000e+00> : vector<8x32xf32>
    %147 = tpu.matmul %145, %146, %cst_48 {dimension_numbers = #tpu.dot_dimension_numbers<[1], [0], [0], [1], [0, 0, 1, 1], [], []>} : vector<8x16xf32>, vector<16x32xf32>, vector<8x32xf32> -> vector<8x32xf32>
    %148 = arith.addf %118, %147 : vector<8x32xf32>
    %149 = vector.extract_strided_slice %10 {offsets = [128, 0], sizes = [32, 32], strides = [1, 1]} : vector<168x32xf32> to vector<32x32xf32>
    %cst_49 = arith.constant dense<0.000000e+00> : vector<16x32xf32>
    %150 = tpu.matmul %88, %149, %cst_49 {dimension_numbers = #tpu.dot_dimension_numbers<[1], [0], [0], [1], [0, 0, 1, 1], [], []>} : vector<16x32xf32>, vector<32x32xf32>, vector<16x32xf32> -> vector<16x32xf32>
    %151 = tpu.concatenate %115, %144 in 1 : vector<8x16xf32>, vector<8x16xf32> -> vector<8x32xf32>
    %c0_50 = arith.constant 0 : index
    %c0_51 = arith.constant 0 : index
    %c0_52 = arith.constant 0 : index
    %152 = vector.load %arg2[%c0_50, %c0_51, %c0_52] : memref<1x16x32xf32, #tpu.memory_space<vmem>>, vector<1x16x32xf32>
    %153 = vector.shape_cast %152 : vector<1x16x32xf32> to vector<16x32xf32>
    %c0_53 = arith.constant 0 : index
    %c0_54 = arith.constant 0 : index
    %c0_55 = arith.constant 0 : index
    %154 = vector.load %arg3[%c0_53, %c0_54, %c0_55] : memref<1x8x32xf32, #tpu.memory_space<vmem>>, vector<1x8x32xf32>
    %155 = vector.shape_cast %154 : vector<1x8x32xf32> to vector<8x32xf32>
    %c0_56 = arith.constant 0 : index
    %c0_57 = arith.constant 0 : index
    %c0_58 = arith.constant 0 : index
    %156 = vector.load %arg6[%c0_56, %c0_57, %c0_58] : memref<1x16x8xf32, #tpu.memory_space<vmem>>, vector<1x16x8xf32>
    %157 = vector.shape_cast %156 : vector<1x16x8xf32> to vector<16x8xf32>
    %c0_59 = arith.constant 0 : index
    %c0_60 = arith.constant 0 : index
    %158 = vector.load %arg10[%c0_59, %c0_60] : memref<168x32xf32, #tpu.memory_space<vmem>>, vector<168x32xf32>
    %159 = vector.extract_strided_slice %158 {offsets = [160, 0], sizes = [1, 32], strides = [1, 1]} : vector<168x32xf32> to vector<1x32xf32>
    %160 = vector.extract_strided_slice %158 {offsets = [161, 0], sizes = [1, 32], strides = [1, 1]} : vector<168x32xf32> to vector<1x32xf32>
    %cst_61 = arith.constant dense<0.000000e+00> : vector<16xf32>
    %161 = vector.multi_reduction <add>, %153, %cst_61 [1] : vector<16x32xf32> to vector<16xf32>
    %162 = vector.shape_cast %161 : vector<16xf32> to vector<16x1xf32>
    %cst_62 = arith.constant 3.200000e+01 : f32
    %163 = vector.broadcast %cst_62 : f32 to vector<16x1xf32>
    %164 = arith.divf %162, %163 : vector<16x1xf32>
    %165 = vector.broadcast %164 : vector<16x1xf32> to vector<16x32xf32>
    %166 = arith.subf %153, %165 : vector<16x32xf32>
    %167 = arith.mulf %166, %166 : vector<16x32xf32>
    %cst_63 = arith.constant dense<0.000000e+00> : vector<16xf32>
    %168 = vector.multi_reduction <add>, %167, %cst_63 [1] : vector<16x32xf32> to vector<16xf32>
    %169 = vector.shape_cast %168 : vector<16xf32> to vector<16x1xf32>
    %cst_64 = arith.constant 3.200000e+01 : f32
    %170 = vector.broadcast %cst_64 : f32 to vector<16x1xf32>
    %171 = arith.divf %169, %170 : vector<16x1xf32>
    %172 = vector.broadcast %164 : vector<16x1xf32> to vector<16x32xf32>
    %173 = arith.subf %153, %172 : vector<16x32xf32>
    %cst_65 = arith.constant 9.99999974E-6 : f32
    %174 = vector.broadcast %cst_65 : f32 to vector<16x1xf32>
    %175 = arith.addf %171, %174 : vector<16x1xf32>
    %176 = math.rsqrt %175 : vector<16x1xf32>
    %177 = vector.broadcast %176 : vector<16x1xf32> to vector<16x32xf32>
    %178 = arith.mulf %173, %177 : vector<16x32xf32>
    %179 = vector.broadcast %159 : vector<1x32xf32> to vector<16x32xf32>
    %180 = arith.mulf %178, %179 : vector<16x32xf32>
    %181 = vector.broadcast %160 : vector<1x32xf32> to vector<16x32xf32>
    %182 = arith.addf %180, %181 : vector<16x32xf32>
    %183 = vector.extract_strided_slice %158 {offsets = [162, 0], sizes = [1, 32], strides = [1, 1]} : vector<168x32xf32> to vector<1x32xf32>
    %184 = vector.extract_strided_slice %158 {offsets = [163, 0], sizes = [1, 32], strides = [1, 1]} : vector<168x32xf32> to vector<1x32xf32>
    %cst_66 = arith.constant dense<0.000000e+00> : vector<8xf32>
    %185 = vector.multi_reduction <add>, %155, %cst_66 [1] : vector<8x32xf32> to vector<8xf32>
    %186 = vector.shape_cast %185 : vector<8xf32> to vector<8x1xf32>
    %cst_67 = arith.constant 3.200000e+01 : f32
    %187 = vector.broadcast %cst_67 : f32 to vector<8x1xf32>
    %188 = arith.divf %186, %187 : vector<8x1xf32>
    %189 = vector.broadcast %188 : vector<8x1xf32> to vector<8x32xf32>
    %190 = arith.subf %155, %189 : vector<8x32xf32>
    %191 = arith.mulf %190, %190 : vector<8x32xf32>
    %cst_68 = arith.constant dense<0.000000e+00> : vector<8xf32>
    %192 = vector.multi_reduction <add>, %191, %cst_68 [1] : vector<8x32xf32> to vector<8xf32>
    %193 = vector.shape_cast %192 : vector<8xf32> to vector<8x1xf32>
    %cst_69 = arith.constant 3.200000e+01 : f32
    %194 = vector.broadcast %cst_69 : f32 to vector<8x1xf32>
    %195 = arith.divf %193, %194 : vector<8x1xf32>
    %196 = vector.broadcast %188 : vector<8x1xf32> to vector<8x32xf32>
    %197 = arith.subf %155, %196 : vector<8x32xf32>
    %cst_70 = arith.constant 9.99999974E-6 : f32
    %198 = vector.broadcast %cst_70 : f32 to vector<8x1xf32>
    %199 = arith.addf %195, %198 : vector<8x1xf32>
    %200 = math.rsqrt %199 : vector<8x1xf32>
    %201 = vector.broadcast %200 : vector<8x1xf32> to vector<8x32xf32>
    %202 = arith.mulf %197, %201 : vector<8x32xf32>
    %203 = vector.broadcast %183 : vector<1x32xf32> to vector<8x32xf32>
    %204 = arith.mulf %202, %203 : vector<8x32xf32>
    %205 = vector.broadcast %184 : vector<1x32xf32> to vector<8x32xf32>
    %206 = arith.addf %204, %205 : vector<8x32xf32>
    %207 = vector.extract_strided_slice %158 {offsets = [164, 0], sizes = [1, 32], strides = [1, 1]} : vector<168x32xf32> to vector<1x32xf32>
    %208 = vector.extract_strided_slice %158 {offsets = [165, 0], sizes = [1, 32], strides = [1, 1]} : vector<168x32xf32> to vector<1x32xf32>
    %cst_71 = arith.constant dense<0.000000e+00> : vector<8xf32>
    %209 = vector.multi_reduction <add>, %155, %cst_71 [1] : vector<8x32xf32> to vector<8xf32>
    %210 = vector.shape_cast %209 : vector<8xf32> to vector<8x1xf32>
    %cst_72 = arith.constant 3.200000e+01 : f32
    %211 = vector.broadcast %cst_72 : f32 to vector<8x1xf32>
    %212 = arith.divf %210, %211 : vector<8x1xf32>
    %213 = vector.broadcast %212 : vector<8x1xf32> to vector<8x32xf32>
    %214 = arith.subf %155, %213 : vector<8x32xf32>
    %215 = arith.mulf %214, %214 : vector<8x32xf32>
    %cst_73 = arith.constant dense<0.000000e+00> : vector<8xf32>
    %216 = vector.multi_reduction <add>, %215, %cst_73 [1] : vector<8x32xf32> to vector<8xf32>
    %217 = vector.shape_cast %216 : vector<8xf32> to vector<8x1xf32>
    %cst_74 = arith.constant 3.200000e+01 : f32
    %218 = vector.broadcast %cst_74 : f32 to vector<8x1xf32>
    %219 = arith.divf %217, %218 : vector<8x1xf32>
    %220 = vector.broadcast %212 : vector<8x1xf32> to vector<8x32xf32>
    %221 = arith.subf %155, %220 : vector<8x32xf32>
    %cst_75 = arith.constant 9.99999974E-6 : f32
    %222 = vector.broadcast %cst_75 : f32 to vector<8x1xf32>
    %223 = arith.addf %219, %222 : vector<8x1xf32>
    %224 = math.rsqrt %223 : vector<8x1xf32>
    %225 = vector.broadcast %224 : vector<8x1xf32> to vector<8x32xf32>
    %226 = arith.mulf %221, %225 : vector<8x32xf32>
    %227 = vector.broadcast %207 : vector<1x32xf32> to vector<8x32xf32>
    %228 = arith.mulf %226, %227 : vector<8x32xf32>
    %229 = vector.broadcast %208 : vector<1x32xf32> to vector<8x32xf32>
    %230 = arith.addf %228, %229 : vector<8x32xf32>
    %231 = vector.extract_strided_slice %158 {offsets = [0, 0], sizes = [32, 32], strides = [1, 1]} : vector<168x32xf32> to vector<32x32xf32>
    %cst_76 = arith.constant dense<0.000000e+00> : vector<16x32xf32>
    %232 = tpu.matmul %182, %231, %cst_76 {dimension_numbers = #tpu.dot_dimension_numbers<[1], [0], [0], [1], [0, 0, 1, 1], [], []>} : vector<16x32xf32>, vector<32x32xf32>, vector<16x32xf32> -> vector<16x32xf32>
    %233 = vector.extract_strided_slice %158 {offsets = [32, 0], sizes = [32, 32], strides = [1, 1]} : vector<168x32xf32> to vector<32x32xf32>
    %cst_77 = arith.constant dense<0.000000e+00> : vector<8x32xf32>
    %234 = tpu.matmul %206, %233, %cst_77 {dimension_numbers = #tpu.dot_dimension_numbers<[1], [0], [0], [1], [0, 0, 1, 1], [], []>} : vector<8x32xf32>, vector<32x32xf32>, vector<8x32xf32> -> vector<8x32xf32>
    %235 = vector.extract_strided_slice %158 {offsets = [64, 0], sizes = [32, 32], strides = [1, 1]} : vector<168x32xf32> to vector<32x32xf32>
    %cst_78 = arith.constant dense<0.000000e+00> : vector<8x32xf32>
    %236 = tpu.matmul %230, %235, %cst_78 {dimension_numbers = #tpu.dot_dimension_numbers<[1], [0], [0], [1], [0, 0, 1, 1], [], []>} : vector<8x32xf32>, vector<32x32xf32>, vector<8x32xf32> -> vector<8x32xf32>
    %237 = vector.extract_strided_slice %158 {offsets = [96, 0], sizes = [32, 32], strides = [1, 1]} : vector<168x32xf32> to vector<32x32xf32>
    %238 = vector.extract_strided_slice %232 {offsets = [0, 0], sizes = [16, 16], strides = [1, 1]} : vector<16x32xf32> to vector<16x16xf32>
    %239 = vector.extract_strided_slice %234 {offsets = [0, 0], sizes = [8, 16], strides = [1, 1]} : vector<8x32xf32> to vector<8x16xf32>
    %240 = vector.extract_strided_slice %236 {offsets = [0, 0], sizes = [8, 16], strides = [1, 1]} : vector<8x32xf32> to vector<8x16xf32>
    %241 = tpu.transpose %239, [1, 0] : vector<8x16xf32> -> vector<16x8xf32>
    %cst_79 = arith.constant dense<0.000000e+00> : vector<16x8xf32>
    %242 = tpu.matmul %238, %241, %cst_79 {dimension_numbers = #tpu.dot_dimension_numbers<[1], [0], [0], [1], [0, 0, 1, 1], [], []>} : vector<16x16xf32>, vector<16x8xf32>, vector<16x8xf32> -> vector<16x8xf32>
    %cst_80 = arith.constant 2.500000e-01 : f32
    %243 = vector.broadcast %cst_80 : f32 to vector<16x8xf32>
    %244 = arith.mulf %242, %243 : vector<16x8xf32>
    %245 = arith.mulf %244, %157 : vector<16x8xf32>
    %cst_81 = arith.constant dense<0xFF800000> : vector<16xf32>
    %246 = vector.multi_reduction <maximumf>, %245, %cst_81 [1] : vector<16x8xf32> to vector<16xf32>
    %247 = vector.shape_cast %246 : vector<16xf32> to vector<16x1xf32>
    %248 = vector.broadcast %247 : vector<16x1xf32> to vector<16x8xf32>
    %249 = arith.subf %245, %248 : vector<16x8xf32>
    %250 = math.exp %249 : vector<16x8xf32>
    %cst_82 = arith.constant dense<0.000000e+00> : vector<16xf32>
    %251 = vector.multi_reduction <add>, %250, %cst_82 [1] : vector<16x8xf32> to vector<16xf32>
    %252 = vector.shape_cast %251 : vector<16xf32> to vector<16x1xf32>
    %253 = tpu.reciprocal %252 {approx = true} : vector<16x1xf32> -> vector<16x1xf32>
    %254 = vector.broadcast %253 : vector<16x1xf32> to vector<16x8xf32>
    %255 = arith.mulf %250, %254 : vector<16x8xf32>
    %256 = arith.mulf %255, %157 : vector<16x8xf32>
    %cst_83 = arith.constant dense<0.000000e+00> : vector<16xf32>
    %257 = vector.multi_reduction <add>, %256, %cst_83 [1] : vector<16x8xf32> to vector<16xf32>
    %258 = vector.shape_cast %257 : vector<16xf32> to vector<16x1xf32>
    %cst_84 = arith.constant 9.99999982E-14 : f32
    %259 = vector.broadcast %cst_84 : f32 to vector<16x1xf32>
    %260 = arith.addf %258, %259 : vector<16x1xf32>
    %261 = tpu.reciprocal %260 {approx = true} : vector<16x1xf32> -> vector<16x1xf32>
    %262 = vector.broadcast %261 : vector<16x1xf32> to vector<16x8xf32>
    %263 = arith.mulf %256, %262 : vector<16x8xf32>
    %cst_85 = arith.constant dense<0.000000e+00> : vector<16x16xf32>
    %264 = tpu.matmul %263, %240, %cst_85 {dimension_numbers = #tpu.dot_dimension_numbers<[1], [0], [0], [1], [0, 0, 1, 1], [], []>} : vector<16x8xf32>, vector<8x16xf32>, vector<16x16xf32> -> vector<16x16xf32>
    %265 = vector.extract_strided_slice %237 {offsets = [0, 0], sizes = [16, 32], strides = [1, 1]} : vector<32x32xf32> to vector<16x32xf32>
    %cst_86 = arith.constant dense<0.000000e+00> : vector<16x32xf32>
    %266 = tpu.matmul %264, %265, %cst_86 {dimension_numbers = #tpu.dot_dimension_numbers<[1], [0], [0], [1], [0, 0, 1, 1], [], []>} : vector<16x16xf32>, vector<16x32xf32>, vector<16x32xf32> -> vector<16x32xf32>
    %267 = vector.extract_strided_slice %232 {offsets = [0, 16], sizes = [16, 16], strides = [1, 1]} : vector<16x32xf32> to vector<16x16xf32>
    %268 = vector.extract_strided_slice %234 {offsets = [0, 16], sizes = [8, 16], strides = [1, 1]} : vector<8x32xf32> to vector<8x16xf32>
    %269 = vector.extract_strided_slice %236 {offsets = [0, 16], sizes = [8, 16], strides = [1, 1]} : vector<8x32xf32> to vector<8x16xf32>
    %270 = tpu.transpose %268, [1, 0] : vector<8x16xf32> -> vector<16x8xf32>
    %cst_87 = arith.constant dense<0.000000e+00> : vector<16x8xf32>
    %271 = tpu.matmul %267, %270, %cst_87 {dimension_numbers = #tpu.dot_dimension_numbers<[1], [0], [0], [1], [0, 0, 1, 1], [], []>} : vector<16x16xf32>, vector<16x8xf32>, vector<16x8xf32> -> vector<16x8xf32>
    %cst_88 = arith.constant 2.500000e-01 : f32
    %272 = vector.broadcast %cst_88 : f32 to vector<16x8xf32>
    %273 = arith.mulf %271, %272 : vector<16x8xf32>
    %274 = arith.mulf %273, %157 : vector<16x8xf32>
    %cst_89 = arith.constant dense<0xFF800000> : vector<16xf32>
    %275 = vector.multi_reduction <maximumf>, %274, %cst_89 [1] : vector<16x8xf32> to vector<16xf32>
    %276 = vector.shape_cast %275 : vector<16xf32> to vector<16x1xf32>
    %277 = vector.broadcast %276 : vector<16x1xf32> to vector<16x8xf32>
    %278 = arith.subf %274, %277 : vector<16x8xf32>
    %279 = math.exp %278 : vector<16x8xf32>
    %cst_90 = arith.constant dense<0.000000e+00> : vector<16xf32>
    %280 = vector.multi_reduction <add>, %279, %cst_90 [1] : vector<16x8xf32> to vector<16xf32>
    %281 = vector.shape_cast %280 : vector<16xf32> to vector<16x1xf32>
    %282 = tpu.reciprocal %281 {approx = true} : vector<16x1xf32> -> vector<16x1xf32>
    %283 = vector.broadcast %282 : vector<16x1xf32> to vector<16x8xf32>
    %284 = arith.mulf %279, %283 : vector<16x8xf32>
    %285 = arith.mulf %284, %157 : vector<16x8xf32>
    %cst_91 = arith.constant dense<0.000000e+00> : vector<16xf32>
    %286 = vector.multi_reduction <add>, %285, %cst_91 [1] : vector<16x8xf32> to vector<16xf32>
    %287 = vector.shape_cast %286 : vector<16xf32> to vector<16x1xf32>
    %cst_92 = arith.constant 9.99999982E-14 : f32
    %288 = vector.broadcast %cst_92 : f32 to vector<16x1xf32>
    %289 = arith.addf %287, %288 : vector<16x1xf32>
    %290 = tpu.reciprocal %289 {approx = true} : vector<16x1xf32> -> vector<16x1xf32>
    %291 = vector.broadcast %290 : vector<16x1xf32> to vector<16x8xf32>
    %292 = arith.mulf %285, %291 : vector<16x8xf32>
    %cst_93 = arith.constant dense<0.000000e+00> : vector<16x16xf32>
    %293 = tpu.matmul %292, %269, %cst_93 {dimension_numbers = #tpu.dot_dimension_numbers<[1], [0], [0], [1], [0, 0, 1, 1], [], []>} : vector<16x8xf32>, vector<8x16xf32>, vector<16x16xf32> -> vector<16x16xf32>
    %294 = vector.extract_strided_slice %237 {offsets = [16, 0], sizes = [16, 32], strides = [1, 1]} : vector<32x32xf32> to vector<16x32xf32>
    %cst_94 = arith.constant dense<0.000000e+00> : vector<16x32xf32>
    %295 = tpu.matmul %293, %294, %cst_94 {dimension_numbers = #tpu.dot_dimension_numbers<[1], [0], [0], [1], [0, 0, 1, 1], [], []>} : vector<16x16xf32>, vector<16x32xf32>, vector<16x32xf32> -> vector<16x32xf32>
    %296 = arith.addf %266, %295 : vector<16x32xf32>
    %297 = vector.extract_strided_slice %158 {offsets = [128, 0], sizes = [32, 32], strides = [1, 1]} : vector<168x32xf32> to vector<32x32xf32>
    %cst_95 = arith.constant dense<0.000000e+00> : vector<8x32xf32>
    %298 = tpu.matmul %236, %297, %cst_95 {dimension_numbers = #tpu.dot_dimension_numbers<[1], [0], [0], [1], [0, 0, 1, 1], [], []>} : vector<8x32xf32>, vector<32x32xf32>, vector<8x32xf32> -> vector<8x32xf32>
    %299 = tpu.concatenate %263, %292 in 1 : vector<16x8xf32>, vector<16x8xf32> -> vector<16x16xf32>
    %c0_96 = arith.constant 0 : index
    %c0_97 = arith.constant 0 : index
    %c0_98 = arith.constant 0 : index
    %300 = vector.load %arg19[%c0_96, %c0_97, %c0_98] : memref<1x8x32xf32, #tpu.memory_space<vmem>>, vector<1x8x32xf32>
    %301 = vector.shape_cast %300 : vector<1x8x32xf32> to vector<8x32xf32>
    %302 = vector.shape_cast %151 : vector<8x32xf32> to vector<1x8x32xf32>
    tpu.vector_store %arg19[%c0_96, %c0_97, %c0_98], %302 {strides = array<i32>} : memref<1x8x32xf32, #tpu.memory_space<vmem>>, vector<1x8x32xf32>,
    %c0_99 = arith.constant 0 : index
    %c0_100 = arith.constant 0 : index
    %c0_101 = arith.constant 0 : index
    %303 = vector.load %arg20[%c0_99, %c0_100, %c0_101] : memref<1x16x16xf32, #tpu.memory_space<vmem>>, vector<1x16x16xf32>
    %304 = vector.shape_cast %303 : vector<1x16x16xf32> to vector<16x16xf32>
    %305 = vector.shape_cast %299 : vector<16x16xf32> to vector<1x16x16xf32>
    tpu.vector_store %arg20[%c0_99, %c0_100, %c0_101], %305 {strides = array<i32>} : memref<1x16x16xf32, #tpu.memory_space<vmem>>, vector<1x16x16xf32>,
    %c0_102 = arith.constant 0 : index
    %c0_103 = arith.constant 0 : index
    %306 = vector.load %arg11[%c0_102, %c0_103] : memref<72x32xf32, #tpu.memory_space<vmem>>, vector<72x32xf32>
    %307 = vector.broadcast %1 : vector<8x1xf32> to vector<8x32xf32>
    %308 = arith.mulf %148, %307 : vector<8x32xf32>
    %309 = vector.extract_strided_slice %306 {offsets = [0, 0], sizes = [32, 32], strides = [1, 1]} : vector<72x32xf32> to vector<32x32xf32>
    %cst_104 = arith.constant dense<0.000000e+00> : vector<8x32xf32>
    %310 = tpu.matmul %308, %309, %cst_104 {dimension_numbers = #tpu.dot_dimension_numbers<[1], [0], [0], [1], [0, 0, 1, 1], [], []>} : vector<8x32xf32>, vector<32x32xf32>, vector<8x32xf32> -> vector<8x32xf32>
    %311 = vector.extract_strided_slice %306 {offsets = [64, 0], sizes = [1, 32], strides = [1, 1]} : vector<72x32xf32> to vector<1x32xf32>
    %312 = vector.broadcast %311 : vector<1x32xf32> to vector<8x32xf32>
    %313 = arith.addf %310, %312 : vector<8x32xf32>
    %314 = math.tanh %313 : vector<8x32xf32>
    %315 = vector.extract_strided_slice %306 {offsets = [32, 0], sizes = [32, 32], strides = [1, 1]} : vector<72x32xf32> to vector<32x32xf32>
    %cst_105 = arith.constant dense<0.000000e+00> : vector<8x32xf32>
    %316 = tpu.matmul %314, %315, %cst_105 {dimension_numbers = #tpu.dot_dimension_numbers<[1], [0], [0], [1], [0, 0, 1, 1], [], []>} : vector<8x32xf32>, vector<32x32xf32>, vector<8x32xf32> -> vector<8x32xf32>
    %317 = vector.extract_strided_slice %306 {offsets = [65, 0], sizes = [1, 32], strides = [1, 1]} : vector<72x32xf32> to vector<1x32xf32>
    %318 = vector.broadcast %317 : vector<1x32xf32> to vector<8x32xf32>
    %319 = arith.addf %316, %318 : vector<8x32xf32>
    %320 = arith.addf %319, %308 : vector<8x32xf32>
    %321 = vector.extract_strided_slice %306 {offsets = [66, 0], sizes = [1, 32], strides = [1, 1]} : vector<72x32xf32> to vector<1x32xf32>
    %322 = vector.extract_strided_slice %306 {offsets = [67, 0], sizes = [1, 32], strides = [1, 1]} : vector<72x32xf32> to vector<1x32xf32>
    %cst_106 = arith.constant dense<0.000000e+00> : vector<8xf32>
    %323 = vector.multi_reduction <add>, %320, %cst_106 [1] : vector<8x32xf32> to vector<8xf32>
    %324 = vector.shape_cast %323 : vector<8xf32> to vector<8x1xf32>
    %cst_107 = arith.constant 3.200000e+01 : f32
    %325 = vector.broadcast %cst_107 : f32 to vector<8x1xf32>
    %326 = arith.divf %324, %325 : vector<8x1xf32>
    %327 = vector.broadcast %326 : vector<8x1xf32> to vector<8x32xf32>
    %328 = arith.subf %320, %327 : vector<8x32xf32>
    %329 = arith.mulf %328, %328 : vector<8x32xf32>
    %cst_108 = arith.constant dense<0.000000e+00> : vector<8xf32>
    %330 = vector.multi_reduction <add>, %329, %cst_108 [1] : vector<8x32xf32> to vector<8xf32>
    %331 = vector.shape_cast %330 : vector<8xf32> to vector<8x1xf32>
    %cst_109 = arith.constant 3.200000e+01 : f32
    %332 = vector.broadcast %cst_109 : f32 to vector<8x1xf32>
    %333 = arith.divf %331, %332 : vector<8x1xf32>
    %334 = vector.broadcast %326 : vector<8x1xf32> to vector<8x32xf32>
    %335 = arith.subf %320, %334 : vector<8x32xf32>
    %cst_110 = arith.constant 9.99999974E-6 : f32
    %336 = vector.broadcast %cst_110 : f32 to vector<8x1xf32>
    %337 = arith.addf %333, %336 : vector<8x1xf32>
    %338 = math.rsqrt %337 : vector<8x1xf32>
    %339 = vector.broadcast %338 : vector<8x1xf32> to vector<8x32xf32>
    %340 = arith.mulf %335, %339 : vector<8x32xf32>
    %341 = vector.broadcast %321 : vector<1x32xf32> to vector<8x32xf32>
    %342 = arith.mulf %340, %341 : vector<8x32xf32>
    %343 = vector.broadcast %322 : vector<1x32xf32> to vector<8x32xf32>
    %344 = arith.addf %342, %343 : vector<8x32xf32>
    %345 = vector.broadcast %1 : vector<8x1xf32> to vector<8x32xf32>
    %346 = arith.mulf %344, %345 : vector<8x32xf32>
    %c0_111 = arith.constant 0 : index
    %c0_112 = arith.constant 0 : index
    %c0_113 = arith.constant 0 : index
    %347 = vector.load %arg15[%c0_111, %c0_112, %c0_113] : memref<1x8x32xf32, #tpu.memory_space<vmem>>, vector<1x8x32xf32>
    %348 = vector.shape_cast %347 : vector<1x8x32xf32> to vector<8x32xf32>
    %349 = vector.shape_cast %346 : vector<8x32xf32> to vector<1x8x32xf32>
    tpu.vector_store %arg15[%c0_111, %c0_112, %c0_113], %349 {strides = array<i32>} : memref<1x8x32xf32, #tpu.memory_space<vmem>>, vector<1x8x32xf32>,
    %c0_114 = arith.constant 0 : index
    %c0_115 = arith.constant 0 : index
    %350 = vector.load %arg12[%c0_114, %c0_115] : memref<72x32xf32, #tpu.memory_space<vmem>>, vector<72x32xf32>
    %351 = vector.broadcast %1 : vector<8x1xf32> to vector<8x32xf32>
    %352 = arith.mulf %298, %351 : vector<8x32xf32>
    %353 = vector.extract_strided_slice %350 {offsets = [0, 0], sizes = [32, 32], strides = [1, 1]} : vector<72x32xf32> to vector<32x32xf32>
    %cst_116 = arith.constant dense<0.000000e+00> : vector<8x32xf32>
    %354 = tpu.matmul %352, %353, %cst_116 {dimension_numbers = #tpu.dot_dimension_numbers<[1], [0], [0], [1], [0, 0, 1, 1], [], []>} : vector<8x32xf32>, vector<32x32xf32>, vector<8x32xf32> -> vector<8x32xf32>
    %355 = vector.extract_strided_slice %350 {offsets = [64, 0], sizes = [1, 32], strides = [1, 1]} : vector<72x32xf32> to vector<1x32xf32>
    %356 = vector.broadcast %355 : vector<1x32xf32> to vector<8x32xf32>
    %357 = arith.addf %354, %356 : vector<8x32xf32>
    %358 = math.tanh %357 : vector<8x32xf32>
    %359 = vector.extract_strided_slice %350 {offsets = [32, 0], sizes = [32, 32], strides = [1, 1]} : vector<72x32xf32> to vector<32x32xf32>
    %cst_117 = arith.constant dense<0.000000e+00> : vector<8x32xf32>
    %360 = tpu.matmul %358, %359, %cst_117 {dimension_numbers = #tpu.dot_dimension_numbers<[1], [0], [0], [1], [0, 0, 1, 1], [], []>} : vector<8x32xf32>, vector<32x32xf32>, vector<8x32xf32> -> vector<8x32xf32>
    %361 = vector.extract_strided_slice %350 {offsets = [65, 0], sizes = [1, 32], strides = [1, 1]} : vector<72x32xf32> to vector<1x32xf32>
    %362 = vector.broadcast %361 : vector<1x32xf32> to vector<8x32xf32>
    %363 = arith.addf %360, %362 : vector<8x32xf32>
    %364 = vector.extract_strided_slice %350 {offsets = [66, 0], sizes = [1, 32], strides = [1, 1]} : vector<72x32xf32> to vector<1x32xf32>
    %365 = vector.extract_strided_slice %350 {offsets = [67, 0], sizes = [1, 32], strides = [1, 1]} : vector<72x32xf32> to vector<1x32xf32>
    %cst_118 = arith.constant dense<0.000000e+00> : vector<8xf32>
    %366 = vector.multi_reduction <add>, %363, %cst_118 [1] : vector<8x32xf32> to vector<8xf32>
    %367 = vector.shape_cast %366 : vector<8xf32> to vector<8x1xf32>
    %cst_119 = arith.constant 3.200000e+01 : f32
    %368 = vector.broadcast %cst_119 : f32 to vector<8x1xf32>
    %369 = arith.divf %367, %368 : vector<8x1xf32>
    %370 = vector.broadcast %369 : vector<8x1xf32> to vector<8x32xf32>
    %371 = arith.subf %363, %370 : vector<8x32xf32>
    %372 = arith.mulf %371, %371 : vector<8x32xf32>
    %cst_120 = arith.constant dense<0.000000e+00> : vector<8xf32>
    %373 = vector.multi_reduction <add>, %372, %cst_120 [1] : vector<8x32xf32> to vector<8xf32>
    %374 = vector.shape_cast %373 : vector<8xf32> to vector<8x1xf32>
    %cst_121 = arith.constant 3.200000e+01 : f32
    %375 = vector.broadcast %cst_121 : f32 to vector<8x1xf32>
    %376 = arith.divf %374, %375 : vector<8x1xf32>
    %377 = vector.broadcast %369 : vector<8x1xf32> to vector<8x32xf32>
    %378 = arith.subf %363, %377 : vector<8x32xf32>
    %cst_122 = arith.constant 9.99999974E-6 : f32
    %379 = vector.broadcast %cst_122 : f32 to vector<8x1xf32>
    %380 = arith.addf %376, %379 : vector<8x1xf32>
    %381 = math.rsqrt %380 : vector<8x1xf32>
    %382 = vector.broadcast %381 : vector<8x1xf32> to vector<8x32xf32>
    %383 = arith.mulf %378, %382 : vector<8x32xf32>
    %384 = vector.broadcast %364 : vector<1x32xf32> to vector<8x32xf32>
    %385 = arith.mulf %383, %384 : vector<8x32xf32>
    %386 = vector.broadcast %365 : vector<1x32xf32> to vector<8x32xf32>
    %387 = arith.addf %385, %386 : vector<8x32xf32>
    %388 = vector.broadcast %1 : vector<8x1xf32> to vector<8x32xf32>
    %389 = arith.mulf %387, %388 : vector<8x32xf32>
    %c0_123 = arith.constant 0 : index
    %c0_124 = arith.constant 0 : index
    %c0_125 = arith.constant 0 : index
    %390 = vector.load %arg16[%c0_123, %c0_124, %c0_125] : memref<1x8x32xf32, #tpu.memory_space<vmem>>, vector<1x8x32xf32>
    %391 = vector.shape_cast %390 : vector<1x8x32xf32> to vector<8x32xf32>
    %392 = vector.shape_cast %389 : vector<8x32xf32> to vector<1x8x32xf32>
    tpu.vector_store %arg16[%c0_123, %c0_124, %c0_125], %392 {strides = array<i32>} : memref<1x8x32xf32, #tpu.memory_space<vmem>>, vector<1x8x32xf32>,
    %c0_126 = arith.constant 0 : index
    %c0_127 = arith.constant 0 : index
    %393 = vector.load %arg13[%c0_126, %c0_127] : memref<72x32xf32, #tpu.memory_space<vmem>>, vector<72x32xf32>
    %394 = vector.broadcast %3 : vector<16x1xf32> to vector<16x32xf32>
    %395 = arith.mulf %296, %394 : vector<16x32xf32>
    %396 = vector.extract_strided_slice %393 {offsets = [0, 0], sizes = [32, 32], strides = [1, 1]} : vector<72x32xf32> to vector<32x32xf32>
    %cst_128 = arith.constant dense<0.000000e+00> : vector<16x32xf32>
    %397 = tpu.matmul %395, %396, %cst_128 {dimension_numbers = #tpu.dot_dimension_numbers<[1], [0], [0], [1], [0, 0, 1, 1], [], []>} : vector<16x32xf32>, vector<32x32xf32>, vector<16x32xf32> -> vector<16x32xf32>
    %398 = vector.extract_strided_slice %393 {offsets = [64, 0], sizes = [1, 32], strides = [1, 1]} : vector<72x32xf32> to vector<1x32xf32>
    %399 = vector.broadcast %398 : vector<1x32xf32> to vector<16x32xf32>
    %400 = arith.addf %397, %399 : vector<16x32xf32>
    %401 = math.tanh %400 : vector<16x32xf32>
    %402 = vector.extract_strided_slice %393 {offsets = [32, 0], sizes = [32, 32], strides = [1, 1]} : vector<72x32xf32> to vector<32x32xf32>
    %cst_129 = arith.constant dense<0.000000e+00> : vector<16x32xf32>
    %403 = tpu.matmul %401, %402, %cst_129 {dimension_numbers = #tpu.dot_dimension_numbers<[1], [0], [0], [1], [0, 0, 1, 1], [], []>} : vector<16x32xf32>, vector<32x32xf32>, vector<16x32xf32> -> vector<16x32xf32>
    %404 = vector.extract_strided_slice %393 {offsets = [65, 0], sizes = [1, 32], strides = [1, 1]} : vector<72x32xf32> to vector<1x32xf32>
    %405 = vector.broadcast %404 : vector<1x32xf32> to vector<16x32xf32>
    %406 = arith.addf %403, %405 : vector<16x32xf32>
    %407 = arith.addf %406, %395 : vector<16x32xf32>
    %408 = vector.extract_strided_slice %393 {offsets = [66, 0], sizes = [1, 32], strides = [1, 1]} : vector<72x32xf32> to vector<1x32xf32>
    %409 = vector.extract_strided_slice %393 {offsets = [67, 0], sizes = [1, 32], strides = [1, 1]} : vector<72x32xf32> to vector<1x32xf32>
    %cst_130 = arith.constant dense<0.000000e+00> : vector<16xf32>
    %410 = vector.multi_reduction <add>, %407, %cst_130 [1] : vector<16x32xf32> to vector<16xf32>
    %411 = vector.shape_cast %410 : vector<16xf32> to vector<16x1xf32>
    %cst_131 = arith.constant 3.200000e+01 : f32
    %412 = vector.broadcast %cst_131 : f32 to vector<16x1xf32>
    %413 = arith.divf %411, %412 : vector<16x1xf32>
    %414 = vector.broadcast %413 : vector<16x1xf32> to vector<16x32xf32>
    %415 = arith.subf %407, %414 : vector<16x32xf32>
    %416 = arith.mulf %415, %415 : vector<16x32xf32>
    %cst_132 = arith.constant dense<0.000000e+00> : vector<16xf32>
    %417 = vector.multi_reduction <add>, %416, %cst_132 [1] : vector<16x32xf32> to vector<16xf32>
    %418 = vector.shape_cast %417 : vector<16xf32> to vector<16x1xf32>
    %cst_133 = arith.constant 3.200000e+01 : f32
    %419 = vector.broadcast %cst_133 : f32 to vector<16x1xf32>
    %420 = arith.divf %418, %419 : vector<16x1xf32>
    %421 = vector.broadcast %413 : vector<16x1xf32> to vector<16x32xf32>
    %422 = arith.subf %407, %421 : vector<16x32xf32>
    %cst_134 = arith.constant 9.99999974E-6 : f32
    %423 = vector.broadcast %cst_134 : f32 to vector<16x1xf32>
    %424 = arith.addf %420, %423 : vector<16x1xf32>
    %425 = math.rsqrt %424 : vector<16x1xf32>
    %426 = vector.broadcast %425 : vector<16x1xf32> to vector<16x32xf32>
    %427 = arith.mulf %422, %426 : vector<16x32xf32>
    %428 = vector.broadcast %408 : vector<1x32xf32> to vector<16x32xf32>
    %429 = arith.mulf %427, %428 : vector<16x32xf32>
    %430 = vector.broadcast %409 : vector<1x32xf32> to vector<16x32xf32>
    %431 = arith.addf %429, %430 : vector<16x32xf32>
    %432 = vector.broadcast %3 : vector<16x1xf32> to vector<16x32xf32>
    %433 = arith.mulf %431, %432 : vector<16x32xf32>
    %c0_135 = arith.constant 0 : index
    %c0_136 = arith.constant 0 : index
    %c0_137 = arith.constant 0 : index
    %434 = vector.load %arg17[%c0_135, %c0_136, %c0_137] : memref<1x16x32xf32, #tpu.memory_space<vmem>>, vector<1x16x32xf32>
    %435 = vector.shape_cast %434 : vector<1x16x32xf32> to vector<16x32xf32>
    %436 = vector.shape_cast %433 : vector<16x32xf32> to vector<1x16x32xf32>
    tpu.vector_store %arg17[%c0_135, %c0_136, %c0_137], %436 {strides = array<i32>} : memref<1x16x32xf32, #tpu.memory_space<vmem>>, vector<1x16x32xf32>,
    %c0_138 = arith.constant 0 : index
    %c0_139 = arith.constant 0 : index
    %437 = vector.load %arg14[%c0_138, %c0_139] : memref<72x32xf32, #tpu.memory_space<vmem>>, vector<72x32xf32>
    %438 = vector.broadcast %3 : vector<16x1xf32> to vector<16x32xf32>
    %439 = arith.mulf %150, %438 : vector<16x32xf32>
    %440 = vector.extract_strided_slice %437 {offsets = [0, 0], sizes = [32, 32], strides = [1, 1]} : vector<72x32xf32> to vector<32x32xf32>
    %cst_140 = arith.constant dense<0.000000e+00> : vector<16x32xf32>
    %441 = tpu.matmul %439, %440, %cst_140 {dimension_numbers = #tpu.dot_dimension_numbers<[1], [0], [0], [1], [0, 0, 1, 1], [], []>} : vector<16x32xf32>, vector<32x32xf32>, vector<16x32xf32> -> vector<16x32xf32>
    %442 = vector.extract_strided_slice %437 {offsets = [64, 0], sizes = [1, 32], strides = [1, 1]} : vector<72x32xf32> to vector<1x32xf32>
    %443 = vector.broadcast %442 : vector<1x32xf32> to vector<16x32xf32>
    %444 = arith.addf %441, %443 : vector<16x32xf32>
    %445 = math.tanh %444 : vector<16x32xf32>
    %446 = vector.extract_strided_slice %437 {offsets = [32, 0], sizes = [32, 32], strides = [1, 1]} : vector<72x32xf32> to vector<32x32xf32>
    %cst_141 = arith.constant dense<0.000000e+00> : vector<16x32xf32>
    %447 = tpu.matmul %445, %446, %cst_141 {dimension_numbers = #tpu.dot_dimension_numbers<[1], [0], [0], [1], [0, 0, 1, 1], [], []>} : vector<16x32xf32>, vector<32x32xf32>, vector<16x32xf32> -> vector<16x32xf32>
    %448 = vector.extract_strided_slice %437 {offsets = [65, 0], sizes = [1, 32], strides = [1, 1]} : vector<72x32xf32> to vector<1x32xf32>
    %449 = vector.broadcast %448 : vector<1x32xf32> to vector<16x32xf32>
    %450 = arith.addf %447, %449 : vector<16x32xf32>
    %451 = vector.extract_strided_slice %437 {offsets = [66, 0], sizes = [1, 32], strides = [1, 1]} : vector<72x32xf32> to vector<1x32xf32>
    %452 = vector.extract_strided_slice %437 {offsets = [67, 0], sizes = [1, 32], strides = [1, 1]} : vector<72x32xf32> to vector<1x32xf32>
    %cst_142 = arith.constant dense<0.000000e+00> : vector<16xf32>
    %453 = vector.multi_reduction <add>, %450, %cst_142 [1] : vector<16x32xf32> to vector<16xf32>
    %454 = vector.shape_cast %453 : vector<16xf32> to vector<16x1xf32>
    %cst_143 = arith.constant 3.200000e+01 : f32
    %455 = vector.broadcast %cst_143 : f32 to vector<16x1xf32>
    %456 = arith.divf %454, %455 : vector<16x1xf32>
    %457 = vector.broadcast %456 : vector<16x1xf32> to vector<16x32xf32>
    %458 = arith.subf %450, %457 : vector<16x32xf32>
    %459 = arith.mulf %458, %458 : vector<16x32xf32>
    %cst_144 = arith.constant dense<0.000000e+00> : vector<16xf32>
    %460 = vector.multi_reduction <add>, %459, %cst_144 [1] : vector<16x32xf32> to vector<16xf32>
    %461 = vector.shape_cast %460 : vector<16xf32> to vector<16x1xf32>
    %cst_145 = arith.constant 3.200000e+01 : f32
    %462 = vector.broadcast %cst_145 : f32 to vector<16x1xf32>
    %463 = arith.divf %461, %462 : vector<16x1xf32>
    %464 = vector.broadcast %456 : vector<16x1xf32> to vector<16x32xf32>
    %465 = arith.subf %450, %464 : vector<16x32xf32>
    %cst_146 = arith.constant 9.99999974E-6 : f32
    %466 = vector.broadcast %cst_146 : f32 to vector<16x1xf32>
    %467 = arith.addf %463, %466 : vector<16x1xf32>
    %468 = math.rsqrt %467 : vector<16x1xf32>
    %469 = vector.broadcast %468 : vector<16x1xf32> to vector<16x32xf32>
    %470 = arith.mulf %465, %469 : vector<16x32xf32>
    %471 = vector.broadcast %451 : vector<1x32xf32> to vector<16x32xf32>
    %472 = arith.mulf %470, %471 : vector<16x32xf32>
    %473 = vector.broadcast %452 : vector<1x32xf32> to vector<16x32xf32>
    %474 = arith.addf %472, %473 : vector<16x32xf32>
    %475 = vector.broadcast %3 : vector<16x1xf32> to vector<16x32xf32>
    %476 = arith.mulf %474, %475 : vector<16x32xf32>
    %c0_147 = arith.constant 0 : index
    %c0_148 = arith.constant 0 : index
    %c0_149 = arith.constant 0 : index
    %477 = vector.load %arg18[%c0_147, %c0_148, %c0_149] : memref<1x16x32xf32, #tpu.memory_space<vmem>>, vector<1x16x32xf32>
    %478 = vector.shape_cast %477 : vector<1x16x32xf32> to vector<16x32xf32>
    %479 = vector.shape_cast %476 : vector<16x32xf32> to vector<1x16x32xf32>
    tpu.vector_store %arg18[%c0_147, %c0_148, %c0_149], %479 {strides = array<i32>} : memref<1x16x32xf32, #tpu.memory_space<vmem>>, vector<1x16x32xf32>,
    return
  }
  func.func @transform_0(%arg0: i32) -> (i32, i32, i32) {
    %c0_i32 = arith.constant 0 : i32
    %c0_i32_0 = arith.constant 0 : i32
    %c0_i32_1 = arith.constant 0 : i32
    return %arg0, %c0_i32, %c0_i32_0 : i32, i32, i32
  }
  func.func @transform_1(%arg0: i32) -> (i32, i32, i32) {
    %c0_i32 = arith.constant 0 : i32
    %c0_i32_0 = arith.constant 0 : i32
    %c0_i32_1 = arith.constant 0 : i32
    return %arg0, %c0_i32, %c0_i32_0 : i32, i32, i32
  }
  func.func @transform_2(%arg0: i32) -> (i32, i32, i32) {
    %c0_i32 = arith.constant 0 : i32
    %c0_i32_0 = arith.constant 0 : i32
    %c0_i32_1 = arith.constant 0 : i32
    return %arg0, %c0_i32, %c0_i32_0 : i32, i32, i32
  }
  func.func @transform_3(%arg0: i32) -> (i32, i32, i32) {
    %c0_i32 = arith.constant 0 : i32
    %c0_i32_0 = arith.constant 0 : i32
    %c0_i32_1 = arith.constant 0 : i32
    return %arg0, %c0_i32, %c0_i32_0 : i32, i32, i32
  }
  func.func @transform_4(%arg0: i32) -> (i32, i32, i32) {
    %c0_i32 = arith.constant 0 : i32
    %c0_i32_0 = arith.constant 0 : i32
    %c0_i32_1 = arith.constant 0 : i32
    return %arg0, %c0_i32, %c0_i32_0 : i32, i32, i32
  }
  func.func @transform_5(%arg0: i32) -> (i32, i32, i32) {
    %c0_i32 = arith.constant 0 : i32
    %c0_i32_0 = arith.constant 0 : i32
    %c0_i32_1 = arith.constant 0 : i32
    return %arg0, %c0_i32, %c0_i32_0 : i32, i32, i32
  }
  func.func @transform_6(%arg0: i32) -> (i32, i32, i32) {
    %c0_i32 = arith.constant 0 : i32
    %c0_i32_0 = arith.constant 0 : i32
    %c0_i32_1 = arith.constant 0 : i32
    return %arg0, %c0_i32, %c0_i32_0 : i32, i32, i32
  }
  func.func @transform_7(%arg0: i32) -> (i32, i32, i32) {
    %c0_i32 = arith.constant 0 : i32
    %c0_i32_0 = arith.constant 0 : i32
    %c0_i32_1 = arith.constant 0 : i32
    return %arg0, %c0_i32, %c0_i32_0 : i32, i32, i32
  }
  func.func @transform_8(%arg0: i32) -> (i32, i32) {
    %c0_i32 = arith.constant 0 : i32
    %c0_i32_0 = arith.constant 0 : i32
    %c0_i32_1 = arith.constant 0 : i32
    return %c0_i32, %c0_i32_0 : i32, i32
  }
  func.func @transform_9(%arg0: i32) -> (i32, i32) {
    %c0_i32 = arith.constant 0 : i32
    %c0_i32_0 = arith.constant 0 : i32
    %c0_i32_1 = arith.constant 0 : i32
    return %c0_i32, %c0_i32_0 : i32, i32
  }
  func.func @transform_10(%arg0: i32) -> (i32, i32) {
    %c0_i32 = arith.constant 0 : i32
    %c0_i32_0 = arith.constant 0 : i32
    %c0_i32_1 = arith.constant 0 : i32
    return %c0_i32, %c0_i32_0 : i32, i32
  }
  func.func @transform_11(%arg0: i32) -> (i32, i32) {
    %c0_i32 = arith.constant 0 : i32
    %c0_i32_0 = arith.constant 0 : i32
    %c0_i32_1 = arith.constant 0 : i32
    return %c0_i32, %c0_i32_0 : i32, i32
  }
  func.func @transform_12(%arg0: i32) -> (i32, i32) {
    %c0_i32 = arith.constant 0 : i32
    %c0_i32_0 = arith.constant 0 : i32
    %c0_i32_1 = arith.constant 0 : i32
    return %c0_i32, %c0_i32_0 : i32, i32
  }
  func.func @transform_13(%arg0: i32) -> (i32, i32) {
    %c0_i32 = arith.constant 0 : i32
    %c0_i32_0 = arith.constant 0 : i32
    %c0_i32_1 = arith.constant 0 : i32
    return %c0_i32, %c0_i32_0 : i32, i32
  }
  func.func @transform_14(%arg0: i32) -> (i32, i32, i32) {
    %c0_i32 = arith.constant 0 : i32
    %c0_i32_0 = arith.constant 0 : i32
    %c0_i32_1 = arith.constant 0 : i32
    return %arg0, %c0_i32, %c0_i32_0 : i32, i32, i32
  }
  func.func @transform_15(%arg0: i32) -> (i32, i32, i32) {
    %c0_i32 = arith.constant 0 : i32
    %c0_i32_0 = arith.constant 0 : i32
    %c0_i32_1 = arith.constant 0 : i32
    return %arg0, %c0_i32, %c0_i32_0 : i32, i32, i32
  }
  func.func @transform_16(%arg0: i32) -> (i32, i32, i32) {
    %c0_i32 = arith.constant 0 : i32
    %c0_i32_0 = arith.constant 0 : i32
    %c0_i32_1 = arith.constant 0 : i32
    return %arg0, %c0_i32, %c0_i32_0 : i32, i32, i32
  }
  func.func @transform_17(%arg0: i32) -> (i32, i32, i32) {
    %c0_i32 = arith.constant 0 : i32
    %c0_i32_0 = arith.constant 0 : i32
    %c0_i32_1 = arith.constant 0 : i32
    return %arg0, %c0_i32, %c0_i32_0 : i32, i32, i32
  }
  func.func @transform_18(%arg0: i32) -> (i32, i32, i32) {
    %c0_i32 = arith.constant 0 : i32
    %c0_i32_0 = arith.constant 0 : i32
    %c0_i32_1 = arith.constant 0 : i32
    return %arg0, %c0_i32, %c0_i32_0 : i32, i32, i32
  }
  func.func @transform_19(%arg0: i32) -> (i32, i32, i32) {
    %c0_i32 = arith.constant 0 : i32
    %c0_i32_0 = arith.constant 0 : i32
    %c0_i32_1 = arith.constant 0 : i32
    return %arg0, %c0_i32, %c0_i32_0 : i32, i32, i32
  }
}

</mosaic_0001>

<bundles_post_ra>
// kernel: forward.1
= control target key start
LH: loop header
LB: loop body
LE: loop exit
PB: predicated region body
PF: predicated region fallthrough
CT: control target
= control target key end

     0   :  { %s3786_s0 = inlined_call_operand.vmem [shape: f32[2,8,32], index: 0, kind: input, shape index: {}]   ;;  %s3787_s1 = inlined_call_operand.vmem [shape: f32[2,16,32], index: 1, kind: input, shape index: {}]   ;;  %s3788_s2 = inlined_call_operand.vmem [shape: f32[2,8,32], index: 2, kind: input, shape index: {}]   ;;  %s3789_s3 = inlined_call_operand.vmem [shape: f32[2,16,32], index: 3, kind: input, shape index: {}]   ;;  %s3790_s4 = inlined_call_operand.vmem [shape: f32[2,8,16], index: 4, kind: input, shape index: {}]   ;;  %s3791_s5 = inlined_call_operand.vmem [shape: f32[2,16,8], index: 5, kind: input, shape index: {}]   ;;  %s3792_s6 = inlined_call_operand.vmem [shape: f32[2,8,1], index: 6, kind: input, shape index: {}]   ;;  %s3793_s7 = inlined_call_operand.vmem [shape: f32[2,16,1], index: 7, kind: input, shape index: {}]   ;;  %s3794_s8 = inlined_call_operand.vmem [shape: f32[168,32], index: 8, kind: input, shape index: {}]   ;;  %s3795_s9 = inlined_call_operand.vmem [shape: f32[168,32], index: 9, kind: input, shape index: {}]   ;;  %s3796_s10 = inlined_call_operand.vmem [shape: f32[72,32], index: 10, kind: input, shape index: {}]   ;;  %s3797_s11 = inlined_call_operand.vmem [shape: f32[72,32], index: 11, kind: input, shape index: {}]   ;;  %s3798_s12 = inlined_call_operand.vmem [shape: f32[72,32], index: 12, kind: input, shape index: {}]   ;;  %s3799_s13 = inlined_call_operand.vmem [shape: f32[72,32], index: 13, kind: input, shape index: {}]   ;;  %s3800_s14 = inlined_call_operand.hbm [shape: f32[2,8,32], index: 14, kind: output, shape index: {0}]   ;;  %s3801_s15 = inlined_call_operand.hbm [shape: f32[2,8,32], index: 15, kind: output, shape index: {1}]   ;;  %s3802_s16 = inlined_call_operand.hbm [shape: f32[2,16,32], index: 16, kind: output, shape index: {2}]   ;;  %s3803_s17 = inlined_call_operand.hbm [shape: f32[2,16,32], index: 17, kind: output, shape index: {3}]   ;;  %s3804_s18 = inlined_call_operand.vmem [shape: f32[2,8,32], index: 18, kind: output, shape index: {4}]   ;;  %s3805_s19 = inlined_call_operand.vmem [shape: f32[2,16,16], index: 19, kind: output, shape index: {5}]  }
   0x1   :  { %3819 = sst [smem:[#allocation18_spill]] %s3786_s0 }
   0x2   :  { %3820 = sst [smem:[#allocation19_spill]] %s3787_s1 }
   0x3   :  { %3821 = sst [smem:[#allocation20_spill]] %s3788_s2 }
   0x4   :  { %3822 = sst [smem:[#allocation21_spill]] %s3789_s3 }
   0x5   :  { %3823 = sst [smem:[#allocation22_spill]] %s3790_s4 }
   0x6   :  { %3824 = sst [smem:[#allocation23_spill]] %s3791_s5 }
   0x7   :  { %3825 = sst [smem:[#allocation24_spill]] %s3792_s6 }
   0x8   :  { %3826 = sst [smem:[#allocation25_spill]] %s3793_s7 }
   0x9   :  { %3827 = sst [smem:[#allocation26_spill]] %s3794_s8 }
   0xa   :  { %3828 = sst [smem:[#allocation27_spill]] %s3795_s9 }
   0xb   :  { %3829 = sst [smem:[#allocation28_spill]] %s3796_s10 }
   0xc   :  { %3830 = sst [smem:[#allocation29_spill]] %s3797_s11 }
   0xd   :  { %25 = vsyncpa [#allocation3], 0 }
   0xe   :  { %27 = vsyncpa [#allocation3 + $0x1], 0 }
   0xf   :  { %28 = vsyncpa [#allocation5], 0 }
  0x10   :  { %30 = vsyncpa [#allocation5 + $0x1], 0 }
  0x11   :  { %31 = vsyncpa [#allocation8], 0 }
  0x12   :  { %33 = vsyncpa [#allocation8 + $0x1], 0  ;;  %s3015_s0 = smov 0   ;;  %s3017_s30 = smov 0  }
  0x13   :  { %s3019_s20 = smov 0   ;;  %s3021_s21 = smov 0  }
  0x14 LB: > { %3831 = sst [smem:[#allocation12_spill]] %s2895_s0  ;;  %s3036_s1 = sadd.s32 4294967295, %s2907_s21   ;;  %s2907_s21 = sphi %s3021_s21, %s3858_s21   ;;  %s2903_s20 = sphi %s3019_s20, %s3860_s20   ;;  %s2899_s30 = sphi %s3017_s30, %s3862_s30   ;;  %s2895_s0 = sphi %s3015_s0, %s3861_s0  }
  0x15   : > { %3832 = sst [smem:[#allocation13_spill]] %s2903_s20  ;;  %s3806_s22 = sadd.s32 4294967294, %s2907_s21  }
  0x16   : > { %3833 = sst [smem:[#allocation14_spill]] %s2907_s21  ;;  %s3040_s2 = sadd.s32 1, %s2907_s21  }
  0x17   : > { %3834 = sst [smem:[#allocation15_spill]] %s3040_s2  ;;  %s380_s23 = sadd.s32 1, %s2903_s20 }
  0x18   : > { %s377_s24 = ssub.s32 %s2907_s21, %s3040_s2  ;;  %p390_p0 = scmp.ne.s32.totalorder %s2903_s20, %s2899_s30 }
  0x19   : > { %p378_p1 = scmp.eq.s32.totalorder %s377_s24, 0  ;;  %p391_p2 = scmp.eq.s32.totalorder %s3036_s1, 1 }
  0x1a   : > { %p396_p3 = scmp.ne.s32.totalorder %s2899_s30, %s2895_s0  ;;  %p397_p4 = scmp.eq.s32.totalorder %s3806_s22, 1 }
  0x1b   : > { %s3053_s25 = scalar_select %p378_p1, %s2903_s20, %s380_s23  }
  0x1c   : > { %p3055_p5 = por %p391_p2, %p390_p0  ;;  %p3059_p6 = por %p397_p4, %p396_p3 }
  0x1d   : > { %3835 = sst [smem:[#allocation16_spill]] %s3053_s25  ;;  %p2524_p7 = scmp.ge.s32.totalorder %s2907_s21, 1 }
  0x1e   : > { %s3837_s26 = scalar_select %p3059_p6, 1, 0 }
  0x1f   : > { %p623_p8 = scmp.lt.s32.totalorder %s2907_s21, 3 }
  0x20   : > { %3838 = sst [smem:[#allocation17_spill]] %s3837_s26 }
  0x21   : > { %p624_p9 = pnand %p2524_p7, %p623_p8 }
  0x22   : > { %p734_p10 = scmp.lt.s32.totalorder (!%p624_p9), %s3036_s1, 1  ;;  %s3839_s22 = sld [smem:[#allocation21_spill]] (!%p624_p9) }
  0x23   : > { %627 = sbr.rel (%p624_p9) target bundleno = 2836 (0xb14), region = 76  ;;  %s3840_s26 = sld [smem:[#allocation18_spill]] (!%p624_p9) }
  0x24   : > { %s3841_s8 = sld [smem:[#allocation26_spill]] (!%p624_p9)  ;;  %s3814_s21 = smov (!%p624_p9), 112  }
  0x25   : > { %s3842_s4 = sld [smem:[#allocation22_spill]] (!%p624_p9)  ;;  %s3846_s2 = smov (!%p624_p9), 112  }
  0x26   : > { %s3843_s20 = sld [smem:[#allocation20_spill]] (!%p624_p9) }
  0x27   : > { %s3845_s9 = sld [smem:[#allocation27_spill]] (!%p624_p9) }
  0x28   : > { %s735_s27 = scalar_select %p734_p10, %s3036_s1, 1  ;;  %vm807_vm0 = vcmask 261120   ;;  %v2909_v6 = vmov 32.0   ;;  %vm978_vm11 = vcmask 130048  }
  0x29   : > { %2679 = vrcp.f32 %v2909_v6  ;;  %s3847_s5 = sld [smem:[#allocation23_spill]] }
  0x2a   : > { %s3067_s28 = sshll.u32 %s735_s27, 4  ;;  %s3069_s29 = sshll.u32 %s735_s27, 3  ;;  %v793_v28 = vld [vmem:[%s3841_s8 + $0x38] sm:$0xff]  ;;  %v792_v30 = vld [vmem:[%s3841_s8 + $0x30] sm:$0xff]  ;;  %v791_v32 = vld [vmem:[%s3841_s8 + $0x28] sm:$0xff] }
  0x2b   : > { %s751_s25 = scalar_lea.vmem %s3839_s22, %s3067_s28  ;;  %s737_s0 = scalar_lea.vmem %s3840_s26, %s3069_s29  ;;  %v797_v29 = vld [vmem:[%s3841_s8 + $0x58] sm:$0xff]  ;;  %938 = vmatpush.msra.mxu1 %v793_v28  ;;  %v796_v31 = vld [vmem:[%s3841_s8 + $0x50] sm:$0xff]  ;;  %v795_v33 = vld [vmem:[%s3841_s8 + $0x48] sm:$0xff] }
  0x2c   : > { %v783_v0 = vld [vmem:[%s751_s25] sm:$0xff]  ;;  %v784_v4 = vld [vmem:[%s751_s25 + $0x8] sm:$0xff]  ;;  %967 = vmatpush.msra.mxu2 %v797_v29  ;;  %v789_v39 = vld [vmem:[%s3841_s8 + $0x18] sm:$0xff]  ;;  %s755_s23 = scalar_lea.vmem %s3842_s4, %s3069_s29  ;;  %s746_s22 = scalar_lea.vmem %s3843_s20, %s3069_s29 }
  0x2d   : > { %v782_v1 = vld [vmem:[%s737_s0] sm:$0xff]  ;;  %v841_v2 = vsel %vm807_vm0, %v783_v0, 0.0  ;;  %v844_v5 = vsel %vm807_vm0, %v784_v4, 0.0  ;;  %939 = vmatpush.msra.mxu1 %v792_v30  ;;  %912 = vmatpush.msra.mxu0 %v789_v39  ;;  %v788_v40 = vld [vmem:[%s3841_s8 + $0x10] sm:$0xff]  ;;  %v787_v41 = vld [vmem:[%s3841_s8 + $0x8] sm:$0xff]  ;;  %s3844_s26 = sld [smem:[#allocation19_spill]] }
  0x2e   : > { %v808_v3 = vsel %vm807_vm0, %v782_v1, 0.0  ;;  %842 = vadd.xlane.f32.xlu0 %v841_v2  ;;  %968 = vmatpush.msra.mxu2 %v796_v31  ;;  %v790_v34 = vld [vmem:[%s3841_s8 + $0x20] sm:$0xff]  ;;  %s3848_s7 = sld [smem:[#allocation25_spill]]  ;;  %s3591_s20 = sand.u32 1, %s2899_s30  }
  0x2f   : > { %809 = vadd.xlane.f32.xlu1 %v808_v3  ;;  %v2680_v7 = vpop.eup %2679  ;;  %940 = vmatpush.msra.mxu1 %v791_v32  ;;  %v794_v35 = vld [vmem:[%s3841_s8 + $0x40] sm:$0xff]  ;;  %s3849_s6 = sld [smem:[#allocation24_spill]] }
  0x30   : > { %v812_v8 = vmul.f32 32.0, %v2680_v7  ;;  %vm816_vm1 = vweird.f32 %v2680_v7  ;;  %969 = vmatpush.msra.mxu2 %v795_v33  ;;  %913 = vmatpush.msra.mxu0 %v788_v40  ;;  %v786_v44 = vld [vmem:[%s3841_s8] sm:$0xff]  ;;  %v805_v33 = vld [vmem:[%s3841_s8 + $0x98] sm:$0xff]  ;;  %s3850_s10 = sld [smem:[#allocation28_spill]] }
  0x31   : > { %941 = vmatpush.msra.mxu1 %v790_v34  ;;  %v806_v53 = vld [vmem:[%s3841_s8 + $0xa0] sm:$0xff]  ;;  %s3851_s11 = sld [smem:[#allocation29_spill]] }
  0x32   : > { %v813_v9 = vsub.f32 1.0, %v812_v8  ;;  %970 = vmatpush.msra.mxu2 %v794_v35  ;;  %914 = vmatpush.msra.mxu0 %v787_v41  ;;  %v885_v58 = vperm.slane %v806_v53, 2  ;;  %v891_v59 = vperm.slane %v806_v53, 4  ;;  %v888_v63 = vperm.slane %v806_v53, 3  ;;  %v804_v35 = vld [vmem:[%s3841_s8 + $0x90] sm:$0xff]  ;;  %v785_v40 = vld [vmem:[%s755_s23] sm:$0xff] }
  0x33   : > { %s742_s27 = scalar_lea.vmem %s3844_s26, %s3067_s28  ;;  %s760_s26 = scalar_lea.vmem %s3847_s5, %s3067_s28 }
  0x34   : > { %v814_v10 = vmul.f32 %v2680_v7, %v813_v9  ;;  %915 = vmatpush.msra.mxu0 %v786_v44  ;;  %s3358_s24 = scalar_lea.vmem %s3848_s7, %s3067_s28 }
  0x35   : > { %s764_s0 = scalar_lea.vmem %s3849_s6, %s3069_s29 }
  0x36   : > { %845 = vadd.xlane.f32.xlu0 %v844_v5  ;;  %v815_v11 = vadd.f32 %v2680_v7, %v814_v10 }
  0x38   : > { %v3082_v12 = vsel %vm816_vm1, %v2680_v7, %v815_v11 }
  0xa1   : > { %v843_v13 = vpop.xlane.xlu0 %842 }
  0xa2   : > { %v847_v14 = vmul.f32 %v843_v13, %v3082_v12  ;;  %v810_v17 = vpop.xlane.xlu1 %809 }
  0xa3   : > { %v818_v21 = vmul.f32 %v3082_v12, %v810_v17 }
  0xa4   : > { %v3085_v15 = vsub.f32 %v783_v0, %v847_v14  ;;  %v894_v0 = vperm.slane %v806_v53, 5 }
  0xa5   : > { %v3096_v24 = vsub.f32 %v782_v1, %v818_v21  ;;  %v837_v21 = vperm.slane %v806_v53, 0 }
  0xa6   : > { %v851_v16 = vmul.f32 %v3085_v15, %v3085_v15 }
  0xa7   : > { %v820_v26 = vmul.f32 %v3096_v24, %v3096_v24 }
  0xa8   : > { %v853_v18 = vsel %vm807_vm0, %v851_v16, 0.0 }
  0xa9   : > { %v846_v19 = vpop.xlane.xlu0 %845  ;;  %854 = vadd.xlane.f32.xlu1 %v853_v18  ;;  %v821_v27 = vsel %vm807_vm0, %v820_v26, 0.0  ;;  %v839_v26 = vperm.slane %v806_v53, 1 }
  0xaa   : > { %v848_v20 = vmul.f32 %v846_v19, %v3082_v12 }
  0xac   : > { %v3092_v22 = vsub.f32 %v784_v4, %v848_v20 }
  0xae   : > { %v852_v23 = vmul.f32 %v3092_v22, %v3092_v22 }
  0xb0   : > { %v856_v25 = vsel %vm807_vm0, %v852_v23, 0.0 }
  0xb1   : > { %857 = vadd.xlane.f32.xlu2 %v856_v25 }
  0xb9   : > { %822 = vadd.xlane.f32.xlu2 %v821_v27 }
 0x11c   : > { %v855_v36 = vpop.xlane.xlu1 %854 }
 0x11d   : > { %v859_v37 = vmul.f32 %v855_v36, %v3082_v12 }
 0x11f   : > { %v861_v38 = vadd.f32 1e-05, %v859_v37  ;;  %v803_v37 = vld [vmem:[%s3841_s8 + $0x88] sm:$0xff] }
 0x121   : > { %2681 = vrsqrt.f32 %v861_v38  ;;  %vm869_vm3 = vweird.f32 %v861_v38 }
 0x124   : > { %v858_v42 = vpop.xlane.xlu2 %857 }
 0x125   : > { %v860_v43 = vmul.f32 %v858_v42, %v3082_v12 }
 0x127   : > { %v2682_v45 = vpop.eup %2681  ;;  %v862_v46 = vadd.f32 1e-05, %v860_v43 }
 0x128   : > { %v864_v47 = vmul.f32 %v2682_v45, %v861_v38  ;;  %vm870_vm2 = vweird.f32 %v2682_v45  ;;  %v802_v38 = vld [vmem:[%s3841_s8 + $0x80] sm:$0xff] }
 0x129   : > { %2683 = vrsqrt.f32 %v862_v46  ;;  %vm871_vm4 = vmor %vm869_vm3, %vm870_vm2  ;;  %vm879_vm6 = vweird.f32 %v862_v46 }
 0x12a   : > { %v865_v48 = vmul.f32 %v2682_v45, %v864_v47 }
 0x12c   : > { %v866_v49 = vmul.f32 0.5, %v865_v48  ;;  %v823_v50 = vpop.xlane.xlu2 %822 }
 0x12d   : > { %v824_v51 = vmul.f32 %v823_v50, %v3082_v12 }
 0x12e   : > { %v867_v52 = vsub.f32 1.5, %v866_v49 }
 0x12f   : > { %v2684_v54 = vpop.eup %2683  ;;  %v825_v55 = vadd.f32 1e-05, %v824_v51 }
 0x130   : > { %v868_v56 = vmul.f32 %v2682_v45, %v867_v52  ;;  %v874_v57 = vmul.f32 %v2684_v54, %v862_v46  ;;  %vm880_vm5 = vweird.f32 %v2684_v54 }
 0x131   : > { %2685 = vrsqrt.f32 %v825_v55  ;;  %vm881_vm7 = vmor %vm879_vm6, %vm880_vm5  ;;  %vm832_vm8 = vweird.f32 %v825_v55  ;;  %vm1428_vm6 = vcmask 64512  }
 0x132   : > { %v872_v60 = vsel %vm871_vm4, %v2682_v45, %v868_v56  ;;  %v875_v61 = vmul.f32 %v2684_v54, %v874_v57 }
 0x133   : > { %v883_v62 = vmul.f32 %v872_v60, %v3085_v15 }
 0x134   : > { %v876_v1 = vmul.f32 0.5, %v875_v61 }
 0x135   : > { %v886_v2 = vmul.f32 %v885_v58, %v883_v62  ;;  %v892_v3 = vmul.f32 %v891_v59, %v883_v62 }
 0x136   : > { %v877_v4 = vsub.f32 1.5, %v876_v1 }
 0x137   : > { %v2686_v5 = vpop.eup %2685  ;;  %v889_v6 = vadd.f32 %v888_v63, %v886_v2  ;;  %v895_v7 = vadd.f32 %v894_v0, %v892_v3  ;;  %v1212_v2 = vld [vmem:[%s742_s27 + $0x8] sm:$0xff] }
 0x138   : > { %v878_v8 = vmul.f32 %v2684_v54, %v877_v4  ;;  %v827_v9 = vmul.f32 %v2686_v5, %v825_v55  ;;  %vm833_vm9 = vweird.f32 %v2686_v5  ;;  %v1240_v3 = vsel %vm807_vm0, %v1212_v2, 0.0 }
 0x139   : > { %2545 = vmatmul.msk.f32.vlgmr.msra.gmra.mxu1 %vm807_vm0, %v889_v6  ;;  %2547 = vmatmul.msk.f32.vlgmr.msra.gmra.mxu2 %vm807_vm0, %v895_v7  ;;  %vm834_vm10 = vmor %vm832_vm8, %vm833_vm9 }
 0x13a   : > { %v882_v10 = vsel %vm881_vm7, %v2684_v54, %v878_v8  ;;  %v828_v11 = vmul.f32 %v2686_v5, %v827_v9 }
 0x13b   : > { %v884_v13 = vmul.f32 %v882_v10, %v3092_v22 }
 0x13c   : > { %v829_v14 = vmul.f32 0.5, %v828_v11  ;;  %v1211_v11 = vld [vmem:[%s742_s27] sm:$0xff]  ;;  %s2144_s27 = sand.u32 1, %s3036_s1  }
 0x13d   : > { %v887_v15 = vmul.f32 %v885_v58, %v884_v13  ;;  %v893_v16 = vmul.f32 %v891_v59, %v884_v13  ;;  %v1237_v13 = vsel %vm807_vm0, %v1211_v11, 0.0  ;;  %s3668_s7 = scalar_lea.sflag [#allocation5], %s2144_s27 }
 0x13e   : > { %v830_v17 = vsub.f32 1.5, %v829_v14 }
 0x13f   : > { %v890_v18 = vadd.f32 %v888_v63, %v887_v15  ;;  %v896_v19 = vadd.f32 %v894_v0, %v893_v16  ;;  %v1213_v63 = vld [vmem:[%s746_s22] sm:$0xff]  ;;  %s2525_s22 = sshll.u32 %s3591_s20, 3 }
 0x140   : > { %v831_v20 = vmul.f32 %v2686_v5, %v830_v17  ;;  %v1287_v1 = vsel %vm807_vm0, %v1213_v63, 0.0  ;;  %s3599_s25 = scalar_lea.vmem [#allocation4], %s2525_s22 }
 0x141   : > { %2546 = vmatmul.msk.f32.gmra.mxu1 %vm807_vm0, %v890_v18  ;;  %2548 = vmatmul.msk.f32.gmra.mxu2 %vm807_vm0, %v896_v19  ;;  %s2190_s5 = sshll.u32 %s3599_s25, 4  ;;  %s2191_s5 = int_to_ptr.vmem [resolvable:$true] %s2190_s5 }
 0x142   : > { %v835_v23 = vsel %vm834_vm10, %v2686_v5, %v831_v20 }
 0x143   : > { %v836_v25 = vmul.f32 %v835_v23, %v3096_v24 }
 0x145   : > { %v838_v22 = vmul.f32 %v837_v21, %v836_v25 }
 0x147   : > { %v840_v27 = vadd.f32 %v839_v26, %v838_v22 }
 0x149   : > { %2544 = vmatmul.msk.f32.vlgmr.msra.gmra.mxu0 %vm807_vm0, %v840_v27 }
 0x1b6   : > { %v943_v28 = vpop.f32.mrf.mxu1 }
 0x1b7   : > { %1053 = vrot.lane.b32.xlu1 %v943_v28, %s3814_s21 }
 0x1bc   : > { %v3153_v29 = vpop.f32.mrf.mxu2 }
 0x1be   : > { %v946_v30 = vpop.f32.mrf.mxu1 }
 0x1bf   : > { %1055 = vrot.lane.b32.xlu0 %v946_v30, %s3814_s21  ;;  %2549 = vmatpush.xpose.msk.msra.mxu3 %vm978_vm11, %v946_v30  ;;  %v799_v30 = vld [vmem:[%s3841_s8 + $0x68] sm:$0xff] }
 0x1c0   : > { %1174 = vmatpush.msrb.mxu2 %v799_v30 }
 0x1c3   : > { %2550 = vmatpush.xpose.msk.msra.mxu3 %vm978_vm11, %v943_v28 }
 0x1c4   : > { %v975_v24 = vpop.f32.mrf.mxu2 }
 0x1c5   : > { %1045 = vmatpush.msrb.mxu0 %v975_v24  ;;  %v2671_v0 = vpack.i.bf16 %v3153_v29, %v975_v24 }
 0x1c6   : > { %v917_v31 = vpop.f32.mrf.mxu0 }
 0x1c7   : > { %1051 = vrot.lane.b32.xlu2 %v917_v31, %s3814_s21  ;;  %2551 = vmatmul.msk.f32.vlgmr.msra.gmra.mxu3 %vm978_vm11, %v917_v31 }
 0x1c8   : > { %1046 = vmatpush.msrb.mxu0 %v3153_v29 }
 0x221   : > { %v1052_v36 = vpop.permute.xlu2 %1051 }
 0x229   : > { %v1054_v34 = vpop.permute.xlu1 %1053 }
 0x231   : > { %v1056_v32 = vpop.permute.xlu0 %1055 }
 0x232   : > { %2553 = vmatpush.xpose.msk.msrb.mxu3 %vm978_vm11, %v1056_v32 }
 0x236   : > { %2554 = vmatpush.xpose.msk.msrb.mxu3 %vm978_vm11, %v1054_v34 }
 0x239   : > { %2555 = vmatmul.msk.f32.vlgmr.msrb.gmra.mxu3 %vm978_vm11, %v1052_v36 }
 0x23a   : > { %1196 = vmatpush.msra.mxu3 %v805_v33  ;;  %v1227_v33 = vld [vmem:[%s3845_s9 + $0x58] sm:$0xff] }
 0x23c   : > { %1197 = vmatpush.msra.mxu3 %v804_v35 }
 0x23e   : > { %1198 = vmatpush.msra.mxu3 %v803_v37  ;;  %v1226_v37 = vld [vmem:[%s3845_s9 + $0x50] sm:$0xff] }
 0x240   : > { %1199 = vmatpush.msra.mxu3 %v802_v38 }
 0x241   : > { %2559 = vmatmul.msk.f32.vlgmr.msra.gmra.mxu3 %vm807_vm0, %v3153_v29 }
 0x249   : > { %2560 = vmatmul.msk.f32.gmra.mxu3 %vm807_vm0, %v975_v24  ;;  %v798_v24 = vld [vmem:[%s3841_s8 + $0x60] sm:$0xff] }
 0x24a   : > { %v1005_v39 = vpop.f32.mrf.mxu3  ;;  %1175 = vmatpush.msrb.mxu2 %v798_v24 }
 0x24b   : > { %v1008_v41 = vmul.f32 0.25, %v1005_v39 }
 0x24c   : > { %1384 = vmatpush.msra.mxu2 %v1227_v33 }
 0x24d   : > { %v1009_v42 = vmul.f32 %v1008_v41, %v785_v40 }
 0x24e   : > { %1385 = vmatpush.msra.mxu2 %v1226_v37 }
 0x24f   : > { %v1010_v43 = vsel %vm978_vm11, %v1009_v42, -inf }
 0x250   : > { %1011 = vmax.xlane.f32.xlu0 %v1010_v43 }
 0x2bc   : > { %v1080_v44 = vpop.f32.mrf.mxu3 }
 0x2bd   : > { %v1083_v45 = vmul.f32 0.25, %v1080_v44 }
 0x2bf   : > { %v1084_v46 = vmul.f32 %v1083_v45, %v785_v40 }
 0x2c1   : > { %v1085_v47 = vsel %vm978_vm11, %v1084_v46, -inf }
 0x2c2   : > { %1086 = vmax.xlane.f32.xlu2 %v1085_v47 }
 0x2c3   : > { %v1012_v48 = vpop.xlane.xlu0 %1011 }
 0x2c4   : > { %v1013_v49 = vsub.f32 %v1009_v42, %v1012_v48  ;;  %v1224_v42 = vld [vmem:[%s3845_s9 + $0x40] sm:$0xff] }
 0x2c6   : > { %v1014_v50 = vmul.f32 1.442695, %v1013_v49 }
 0x2c8   : > { %2687 = vpow2.f32 %v1014_v50 }
 0x2ce   : > { %v2688_v51 = vpop.eup %2687 }
 0x2cf   : > { %v1016_v52 = vsel %vm978_vm11, %v2688_v51, 0.0 }
 0x2d0   : > { %1017 = vadd.xlane.f32.xlu1 %v1016_v52  ;;  %v3247_v52 = vld [vmem:[%s3845_s9 + $0xa0] sm:$0xff] }
 0x335   : > { %v1087_v53 = vpop.xlane.xlu2 %1086 }
 0x336   : > { %v1088_v54 = vsub.f32 %v1084_v46, %v1087_v53 }
 0x338   : > { %v1089_v55 = vmul.f32 1.442695, %v1088_v54 }
 0x33a   : > { %2689 = vpow2.f32 %v1089_v55  ;;  %v1309_v55 = vperm.slane %v3247_v52, 2 }
 0x340   : > { %v2690_v56 = vpop.eup %2689 }
 0x341   : > { %v1091_v57 = vsel %vm978_vm11, %v2690_v56, 0.0 }
 0x342   : > { %1092 = vadd.xlane.f32.xlu0 %v1091_v57 }
 0x343   : > { %v1018_v58 = vpop.xlane.xlu1 %1017 }
 0x344   : > { %2691 = vrcp.f32 %v1018_v58 }
 0x34a   : > { %v2692_v59 = vpop.eup %2691 }
 0x34b   : > { %v1020_v60 = vmul.f32 %v2692_v59, %v2688_v51  ;;  %v1315_v59 = vperm.slane %v3247_v52, 5 }
 0x34d   : > { %v1021_v61 = vmul.f32 %v1020_v60, %v785_v40  ;;  %v1311_v60 = vperm.slane %v3247_v52, 3 }
 0x34f   : > { %v1022_v62 = vsel %vm978_vm11, %v1021_v61, 0.0 }
 0x350   : > { %1023 = vadd.xlane.f32.xlu2 %v1022_v62 }
 0x356   : > { %2672 = vrot.lane.b32.xlu0 %v2671_v0, %s3814_s21 }
 0x358   : > { %1288 = vadd.xlane.f32.xlu2 %v1287_v1  ;;  %v801_v1 = vld [vmem:[%s3841_s8 + $0x78] sm:$0xff] }
 0x359   : > { %1151 = vmatpush.msrb.mxu1 %v801_v1 }
 0x360   : > { %1241 = vadd.xlane.f32.xlu2 %v1240_v3  ;;  %v1223_v3 = vld [vmem:[%s3845_s9 + $0x38] sm:$0xff] }
 0x3b5   : > { %v1093_v4 = vpop.xlane.xlu0 %1092 }
 0x3b6   : > { %2693 = vrcp.f32 %v1093_v4  ;;  %v1222_v4 = vld [vmem:[%s3845_s9 + $0x30] sm:$0xff] }
 0x3bc   : > { %v2694_v5 = vpop.eup %2693 }
 0x3bd   : > { %v1095_v6 = vmul.f32 %v2694_v5, %v2690_v56  ;;  %v1313_v56 = vperm.slane %v3247_v52, 4  ;;  %v1221_v5 = vld [vmem:[%s3845_s9 + $0x28] sm:$0xff] }
 0x3bf   : > { %v1096_v7 = vmul.f32 %v1095_v6, %v785_v40  ;;  %v1225_v40 = vld [vmem:[%s3845_s9 + $0x48] sm:$0xff]  ;;  %v1220_v6 = vld [vmem:[%s3845_s9 + $0x20] sm:$0xff] }
 0x3c0   : > { %1386 = vmatpush.msra.mxu2 %v1225_v40  ;;  %v1284_v40 = vperm.slane %v3247_v52, 1 }
 0x3c1   : > { %v1097_v8 = vsel %vm978_vm11, %v1096_v7, 0.0 }
 0x3c2   : > { %1098 = vadd.xlane.f32.xlu1 %v1097_v8  ;;  %1387 = vmatpush.msra.mxu2 %v1224_v42 }
 0x3c3   : > { %v1024_v9 = vpop.xlane.xlu2 %1023 }
 0x3c4   : > { %v1025_v10 = vadd.f32 1e-13, %v1024_v9  ;;  %v1219_v9 = vld [vmem:[%s3845_s9 + $0x18] sm:$0xff] }
 0x3c6   : > { %2695 = vrcp.f32 %v1025_v10 }
 0x3c8   : > { %v2673_v14 = vpop.permute.xlu0 %2672 }
 0x3c9   : > { %v2674_v15 = vunpack.i.l.bf16 %v2673_v14  ;;  %v2675_v16 = vunpack.i.h.bf16 %v2673_v14  ;;  %v1216_v14 = vld [vmem:[%s3845_s9] sm:$0xff] }
 0x3ca   : > { %1238 = vadd.xlane.f32.xlu1 %v1237_v13  ;;  %v1217_v13 = vld [vmem:[%s3845_s9 + $0x8] sm:$0xff] }
 0x3cb   : > { %v1289_v17 = vpop.xlane.xlu2 %1288  ;;  %1128 = vmatpush.msra.mxu0 %v2674_v15 }
 0x3cc   : > { %v2696_v18 = vpop.eup %2695  ;;  %v1290_v19 = vmul.f32 %v1289_v17, %v3082_v12 }
 0x3cd   : > { %1129 = vmatpush.msra.mxu0 %v2675_v16  ;;  %v3203_v20 = vmul.f32 %v2696_v18, %v1021_v61 }
 0x3ce   : > { %v1291_v21 = vsub.f32 %v1213_v63, %v1290_v19 }
 0x3cf   : > { %2552 = vmatmul.msk.f32.vlgmr.msrb.gmra.mxu0 %vm978_vm11, %v3203_v20 }
 0x3d0   : > { %v1292_v23 = vmul.f32 %v1291_v21, %v1291_v21  ;;  %1335 = vmatpush.msrb.mxu0 %v1219_v9 }
 0x3d2   : > { %v1293_v25 = vsel %vm807_vm0, %v1292_v23, 0.0 }
 0x3d3   : > { %v1242_v26 = vpop.xlane.xlu2 %1241  ;;  %1294 = vadd.xlane.f32.xlu1 %v1293_v25 }
 0x3d4   : > { %v1244_v22 = vmul.f32 %v1242_v26, %v3082_v12 }
 0x3d6   : > { %v3209_v27 = vsub.f32 %v1212_v2, %v1244_v22  ;;  %v800_v2 = vld [vmem:[%s3841_s8 + $0x70] sm:$0xff] }
 0x3d7   : > { %1152 = vmatpush.msrb.mxu1 %v800_v2  ;;  %v3336_v2 = vpop.f32.mrf.mxu3 }
 0x3d8   : > { %v1248_v28 = vmul.f32 %v3209_v27, %v3209_v27 }
 0x3d9   : > { %1361 = vmatpush.msra.mxu1 %v1223_v3 }
 0x3da   : > { %v1252_v29 = vsel %vm807_vm0, %v1248_v28, 0.0 }
 0x3db   : > { %1253 = vadd.xlane.f32.xlu0 %v1252_v29  ;;  %1362 = vmatpush.msra.mxu1 %v1222_v4 }
 0x3dd   : > { %1363 = vmatpush.msra.mxu1 %v1221_v5 }
 0x3df   : > { %1364 = vmatpush.msra.mxu1 %v1220_v6  ;;  %v3338_v3 = vpop.f32.mrf.mxu3 }
 0x435   : > { %v1099_v31 = vpop.xlane.xlu1 %1098 }
 0x436   : > { %v1100_v32 = vadd.f32 1e-13, %v1099_v31 }
 0x438   : > { %2697 = vrcp.f32 %v1100_v32 }
 0x43d   : > { %v1239_v34 = vpop.xlane.xlu1 %1238 }
 0x43e   : > { %v2698_v35 = vpop.eup %2697  ;;  %v1243_v36 = vmul.f32 %v1239_v34, %v3082_v12  ;;  %v1281_v34 = vperm.slane %v3247_v52, 0 }
 0x43f   : > { %v3227_v38 = vmul.f32 %v2698_v35, %v1096_v7 }
 0x440   : > { %v3229_v39 = vsub.f32 %v1211_v11, %v1243_v36  ;;  %v1218_v11 = vld [vmem:[%s3845_s9 + $0x10] sm:$0xff] }
 0x441   : > { %2556 = vmatmul.msk.f32.vlgmr.msra.gmra.mxu0 %vm978_vm11, %v3227_v38 }
 0x442   : > { %v1247_v41 = vmul.f32 %v3229_v39, %v3229_v39  ;;  %1336 = vmatpush.msrb.mxu0 %v1218_v11 }
 0x444   : > { %v1249_v43 = vsel %vm807_vm0, %v1247_v41, 0.0  ;;  %1337 = vmatpush.msrb.mxu0 %v1217_v13 }
 0x445   : > { %1250 = vadd.xlane.f32.xlu2 %v1249_v43 }
 0x446   : > { %v1295_v44 = vpop.xlane.xlu1 %1294  ;;  %1338 = vmatpush.msrb.mxu0 %v1216_v14 }
 0x447   : > { %v1296_v45 = vmul.f32 %v1295_v44, %v3082_v12 }
 0x449   : > { %v1297_v46 = vadd.f32 1e-05, %v1296_v45 }
 0x44b   : > { %2699 = vrsqrt.f32 %v1297_v46  ;;  %vm1304_vm12 = vweird.f32 %v1297_v46 }
 0x44c   : > { %v1048_v47 = vpop.f32.mrf.mxu0 }
 0x44d   : > { %2558 = vmatmul.msk.f32.vlgmr.msrb.gmra.mxu2 %vm978_vm11, %v1048_v47 }
 0x44e   : > { %v1254_v7 = vpop.xlane.xlu0 %1253 }
 0x44f   : > { %v1256_v8 = vmul.f32 %v1254_v7, %v3082_v12 }
 0x451   : > { %v2700_v48 = vpop.eup %2699  ;;  %v1258_v10 = vadd.f32 1e-05, %v1256_v8 }
 0x452   : > { %v1299_v49 = vmul.f32 %v2700_v48, %v1297_v46  ;;  %vm1305_vm13 = vweird.f32 %v2700_v48 }
 0x453   : > { %vm1306_vm14 = vmor %vm1304_vm12, %vm1305_vm13  ;;  %2701 = vrsqrt.f32 %v1258_v10  ;;  %vm1275_vm15 = vweird.f32 %v1258_v10 }
 0x454   : > { %v1300_v50 = vmul.f32 %v2700_v48, %v1299_v49  ;;  %v1235_v49 = vld [vmem:[%s3845_s9 + $0x98] sm:$0xff] }
 0x456   : > { %v1301_v51 = vmul.f32 0.5, %v1300_v50 }
 0x458   : > { %v1302_v53 = vsub.f32 1.5, %v1301_v51  ;;  %v1234_v51 = vld [vmem:[%s3845_s9 + $0x90] sm:$0xff] }
 0x459   : > { %v2702_v16 = vpop.eup %2701 }
 0x45a   : > { %v1303_v54 = vmul.f32 %v2700_v48, %v1302_v53  ;;  %v1270_v19 = vmul.f32 %v2702_v16, %v1258_v10  ;;  %vm1276_vm1 = vweird.f32 %v2702_v16  ;;  %v1233_v53 = vld [vmem:[%s3845_s9 + $0x88] sm:$0xff] }
 0x45b   : > { %vm1277_vm3 = vmor %vm1275_vm15, %vm1276_vm1 }
 0x45c   : > { %v1307_v57 = vsel %vm1306_vm14, %v2700_v48, %v1303_v54  ;;  %v1271_v23 = vmul.f32 %v2702_v16, %v1270_v19  ;;  %v1232_v54 = vld [vmem:[%s3845_s9 + $0x80] sm:$0xff] }
 0x45d   : > { %v1308_v58 = vmul.f32 %v1307_v57, %v1291_v21  ;;  %v3326_v57 = vld [vmem:[%s760_s26] sm:$0xff] }
 0x45e   : > { %v1272_v26 = vmul.f32 0.5, %v1271_v23 }
 0x45f   : > { %v1310_v61 = vmul.f32 %v1309_v55, %v1308_v58  ;;  %v1314_v62 = vmul.f32 %v1313_v56, %v1308_v58 }
 0x460   : > { %v1273_v29 = vsub.f32 1.5, %v1272_v26 }
 0x461   : > { %v1316_v63 = vadd.f32 %v1315_v59, %v1314_v62  ;;  %v1312_v0 = vadd.f32 %v1311_v60, %v1310_v61  ;;  %v3332_v62 = vld [vmem:[%s760_s26 + $0x8] sm:$0xff]  ;;  %s3816_s26 = smov 8  }
 0x462   : > { %v1274_v31 = vmul.f32 %v2702_v16, %v1273_v29 }
 0x463   : > { %2564 = vmatmul.msk.f32.vlgmr.msra.gmra.mxu2 %vm807_vm0, %v1316_v63 }
 0x464   : > { %v1278_v36 = vsel %vm1277_vm3, %v2702_v16, %v1274_v31 }
 0x465   : > { %v1280_v42 = vmul.f32 %v1278_v36, %v3209_v27 }
 0x467   : > { %v1283_v43 = vmul.f32 %v1281_v34, %v1280_v42 }
 0x469   : > { %v1286_v44 = vadd.f32 %v1284_v40, %v1283_v43  ;;  %v2911_v43 = vmov 0  }
 0x46a   : > { %2678 = vset.pattern.permute.xlu2 %v2911_v43  ;;  %2676 = vset.pattern.permute.xlu0 %v2911_v43 }
 0x46b   : > { %2677 = vset.pattern.permute.xlu1 %v2911_v43 }
 0x4b8   : > { %v1251_v15 = vpop.xlane.xlu2 %1250 }
 0x4b9   : > { %v1255_v17 = vmul.f32 %v1251_v15, %v3082_v12 }
 0x4bb   : > { %v1257_v18 = vadd.f32 1e-05, %v1255_v17 }
 0x4bd   : > { %2703 = vrsqrt.f32 %v1257_v18  ;;  %vm1265_vm4 = vweird.f32 %v1257_v18 }
 0x4be   : > { %v1131_v21 = vpop.f32.mrf.mxu0 }
 0x4bf   : > { %2557 = vmatmul.msk.f32.vlgmr.msrb.gmra.mxu1 %vm978_vm11, %v1131_v21 }
 0x4c3   : > { %v2704_v25 = vpop.eup %2703 }
 0x4c4   : > { %v1260_v22 = vmul.f32 %v2704_v25, %v1257_v18  ;;  %vm1266_vm2 = vweird.f32 %v2704_v25 }
 0x4c5   : > { %vm1267_vm5 = vmor %vm1265_vm4, %vm1266_vm2 }
 0x4c6   : > { %v1261_v28 = vmul.f32 %v2704_v25, %v1260_v22 }
 0x4c7   : > { %2563 = vmatmul.msk.f32.vlgmr.msra.gmra.mxu1 %vm807_vm0, %v1312_v0 }
 0x4c8   : > { %v1262_v30 = vmul.f32 0.5, %v1261_v28 }
 0x4ca   : > { %v1263_v24 = vsub.f32 1.5, %v1262_v30 }
 0x4cc   : > { %v1264_v32 = vmul.f32 %v2704_v25, %v1263_v24 }
 0x4ce   : > { %v1268_v33 = vsel %vm1267_vm5, %v2704_v25, %v1264_v32 }
 0x4cf   : > { %v1279_v35 = vmul.f32 %v1268_v33, %v3229_v39 }
 0x4d0   : > { %v3294_v45 = vpop.f32.mrf.mxu2 }
 0x4d1   : > { %v1282_v37 = vmul.f32 %v1281_v34, %v1279_v35 }
 0x4d3   : > { %v1285_v41 = vadd.f32 %v1284_v40, %v1282_v37 }
 0x4d5   : > { %2561 = vmatmul.msk.f32.vlgmr.msrb.gmra.mxu0 %vm807_vm0, %v1285_v41 }
 0x4dd   : > { %2562 = vmatmul.msk.f32.gmra.mxu0 %vm807_vm0, %v1286_v44 }
 0x4e6   : > { %v3296_v46 = vpop.f32.mrf.mxu2 }
 0x4e7   : > { %1486 = vmatpush.msrb.mxu2 %v3296_v46 }
 0x53c   : > { %v3299_v39 = vpop.f32.mrf.mxu1 }
 0x544   : > { %v1366_v47 = vpop.f32.mrf.mxu1 }
 0x545   : > { %1498 = vrot.lane.b32.xlu1 %v1366_v47, %s3846_s2  ;;  %2565 = vmatpush.xpose.msk.msrb.mxu1 %vm978_vm11, %v1366_v47 }
 0x552   : > { %v1340_v27 = vpop.f32.mrf.mxu0 }
 0x553   : > { %1494 = vrot.lane.b32.xlu2 %v1340_v27, %s3846_s2  ;;  %2566 = vmatmul.msk.f32.vlgmr.msrb.gmra.mxu1 %vm978_vm11, %v1340_v27 }
 0x55a   : > { %v1343_v48 = vpop.f32.mrf.mxu0 }
 0x55b   : > { %1496 = vrot.lane.b32.xlu1 %v1343_v48, %s3846_s2  ;;  %2567 = vmatmul.msk.f32.gmra.mxu1 %vm978_vm11, %v1343_v48 }
 0x5ad   : > { %v1495_v52 = vpop.permute.xlu2 %1494 }
 0x5b7   : > { %v1499_v50 = vpop.permute.xlu1 %1498 }
 0x5b8   : > { %2570 = vmatpush.xpose.msk.msrb.mxu3 %vm978_vm11, %v1499_v50 }
 0x5bb   : > { %2571 = vmatmul.msk.f32.vlgmr.msrb.gmra.mxu3 %vm978_vm11, %v1495_v52 }
 0x5bc   : > { %1674 = vmatpush.msra.mxu3 %v1235_v49  ;;  %v781_v49 = vld [vmem:[%s3358_s24 + $0x8] sm:$0xff] }
 0x5be   : > { %1675 = vmatpush.msra.mxu3 %v1234_v51 }
 0x5c0   : > { %1676 = vmatpush.msra.mxu3 %v1233_v53 }
 0x5c2   : > { %1677 = vmatpush.msra.mxu3 %v1232_v54 }
 0x5cd   : > { %v1497_v55 = vpop.permute.xlu1 %1496 }
 0x5ce   : > { %2572 = vmatmul.msk.f32.gmra.mxu3 %vm978_vm11, %v1497_v55 }
 0x5d0   : > { %v1418_v56 = vpop.f32.mrf.mxu1 }
 0x5d1   : > { %v1424_v58 = vmul.f32 0.25, %v1418_v56 }
 0x5d3   : > { %v1426_v59 = vmul.f32 %v1424_v58, %v3326_v57 }
 0x5d5   : > { %v1429_v60 = vsel %vm1428_vm6, %v1426_v59, -inf }
 0x5d6   : > { %2579 = vmatmul.msk.f32.vlgmr.msra.gmra.mxu3 %vm807_vm0, %v3296_v46  ;;  %1430 = vmax.xlane.f32.xlu2 %v1429_v60 }
 0x5d8   : > { %v1421_v61 = vpop.f32.mrf.mxu1 }
 0x5d9   : > { %v1425_v63 = vmul.f32 0.25, %v1421_v61  ;;  %v779_v61 = vld [vmem:[%s764_s0] sm:$0xff]  ;;  %s2913_s0 = smov 16  }
 0x5db   : > { %v1427_v0 = vmul.f32 %v1425_v63, %v3332_v62 }
 0x5dd   : > { %v1432_v1 = vsel %vm1428_vm6, %v1427_v0, -inf }
 0x5de   : > { %1433 = vmax.xlane.f32.xlu1 %v1432_v1 }
 0x63e   : > { %v1523_v4 = vpop.f32.mrf.mxu3 }
 0x63f   : > { %v1529_v5 = vmul.f32 0.25, %v1523_v4 }
 0x641   : > { %v1531_v6 = vmul.f32 %v1529_v5, %v3326_v57 }
 0x643   : > { %v1533_v7 = vsel %vm1428_vm6, %v1531_v6, -inf }
 0x644   : > { %1534 = vmax.xlane.f32.xlu0 %v1533_v7  ;;  %v780_v7 = vld [vmem:[%s3358_s24] sm:$0xff]  ;;  %s3818_s24 = sshll.u32 %s3591_s20, 4 }
 0x645   : > { %s3657_s21 = scalar_lea.vmem [#allocation7], %s3818_s24 }
 0x649   : > { %v1431_v8 = vpop.xlane.xlu2 %1430 }
 0x64a   : > { %v1435_v9 = vsub.f32 %v1426_v59, %v1431_v8  ;;  %v1696_v8 = vld [vmem:[%s3850_s10 + $0x18] sm:$0xff] }
 0x64c   : > { %v1437_v10 = vmul.f32 1.442695, %v1435_v9  ;;  %v1695_v9 = vld [vmem:[%s3850_s10 + $0x10] sm:$0xff] }
 0x64e   : > { %2705 = vpow2.f32 %v1437_v10 }
 0x651   : > { %v1526_v11 = vpop.f32.mrf.mxu3  ;;  %v1434_v14 = vpop.xlane.xlu1 %1433 }
 0x652   : > { %v1530_v13 = vmul.f32 0.25, %v1526_v11  ;;  %v1436_v16 = vsub.f32 %v1427_v0, %v1434_v14  ;;  %v1693_v14 = vld [vmem:[%s3850_s10] sm:$0xff] }
 0x654   : > { %v1532_v15 = vmul.f32 %v1530_v13, %v3332_v62  ;;  %v1439_v18 = vmul.f32 1.442695, %v1436_v16  ;;  %v2706_v19 = vpop.eup %2705  ;;  %v1694_v13 = vld [vmem:[%s3850_s10 + $0x8] sm:$0xff] }
 0x655   : > { %v1441_v21 = vsel %vm1428_vm6, %v2706_v19, 0.0 }
 0x656   : > { %v1536_v17 = vsel %vm1428_vm6, %v1532_v15, -inf  ;;  %2707 = vpow2.f32 %v1439_v18  ;;  %v1789_v18 = vld [vmem:[%s3851_s11 + $0x18] sm:$0xff] }
 0x657   : > { %1537 = vmax.xlane.f32.xlu0 %v1536_v17 }
 0x65c   : > { %v2708_v23 = vpop.eup %2707 }
 0x65d   : > { %v1444_v25 = vsel %vm1428_vm6, %v2708_v23, 0.0 }
 0x65f   : > { %1442 = vadd.xlane.f32.xlu0 %v1441_v21  ;;  %v1788_v21 = vld [vmem:[%s3851_s11 + $0x10] sm:$0xff] }
 0x667   : > { %1445 = vadd.xlane.f32.xlu0 %v1444_v25  ;;  %v1786_v25 = vld [vmem:[%s3851_s11] sm:$0xff] }
 0x6b7   : > { %v1535_v26 = vpop.xlane.xlu0 %1534 }
 0x6b8   : > { %v1539_v22 = vsub.f32 %v1531_v6, %v1535_v26 }
 0x6ba   : > { %v1541_v28 = vmul.f32 1.442695, %v1539_v22 }
 0x6bc   : > { %2709 = vpow2.f32 %v1541_v28 }
 0x6c2   : > { %v2710_v29 = vpop.eup %2709 }
 0x6c3   : > { %v1545_v30 = vsel %vm1428_vm6, %v2710_v29, 0.0 }
 0x6c4   : > { %1546 = vadd.xlane.f32.xlu2 %v1545_v30  ;;  %v1231_v30 = vld [vmem:[%s3845_s9 + $0x78] sm:$0xff] }
 0x6c5   : > { %1622 = vmatpush.msra.mxu1 %v1231_v30 }
 0x6ca   : > { %v1538_v24 = vpop.xlane.xlu0 %1537 }
 0x6cb   : > { %v1540_v31 = vsub.f32 %v1532_v15, %v1538_v24  ;;  %v1229_v15 = vld [vmem:[%s3845_s9 + $0x68] sm:$0xff] }
 0x6cc   : > { %1651 = vmatpush.msra.mxu2 %v1229_v15 }
 0x6cd   : > { %v1543_v32 = vmul.f32 1.442695, %v1540_v31  ;;  %v1178_v31 = vadd.f32 %v3294_v45, %v3299_v39  ;;  %v2012_v39 = vld [vmem:[%s3799_s13] sm:$0xff] }
 0x6cf   : > { %2711 = vpow2.f32 %v1543_v32 }
 0x6d2   : > { %v1443_v33 = vpop.xlane.xlu0 %1442 }
 0x6d3   : > { %2713 = vrcp.f32 %v1443_v33  ;;  %v2015_v33 = vld [vmem:[%s3799_s13 + $0x18] sm:$0xff] }
 0x6d5   : > { %v2712_v34 = vpop.eup %2711 }
 0x6d6   : > { %v1548_v35 = vsel %vm1428_vm6, %v2712_v34, 0.0 }
 0x6d7   : > { %1549 = vadd.xlane.f32.xlu0 %v1548_v35  ;;  %v2013_v35 = vld [vmem:[%s3799_s13 + $0x8] sm:$0xff] }
 0x6d9   : > { %v2714_v36 = vpop.eup %2713 }
 0x6da   : > { %v1446_v37 = vpop.xlane.xlu0 %1445  ;;  %v1449_v40 = vmul.f32 %v2714_v36, %v2706_v19  ;;  %v1228_v19 = vld [vmem:[%s3845_s9 + $0x60] sm:$0xff]  ;;  %v1679_v36 = vpop.f32.mrf.mxu3 }
 0x6db   : > { %2715 = vrcp.f32 %v1446_v37  ;;  %1652 = vmatpush.msra.mxu2 %v1228_v19  ;;  %v1875_v19 = vld [vmem:[%s3798_s12 + $0x10] sm:$0xff] }
 0x6dc   : > { %v1451_v41 = vmul.f32 %v1449_v40, %v3326_v57 }
 0x6de   : > { %v1453_v42 = vsel %vm1428_vm6, %v1451_v41, 0.0 }
 0x6df   : > { %1454 = vadd.xlane.f32.xlu1 %v1453_v42 }
 0x6e1   : > { %v2716_v44 = vpop.eup %2715 }
 0x6e2   : > { %v1450_v47 = vmul.f32 %v2716_v44, %v2708_v23  ;;  %v1787_v23 = vld [vmem:[%s3851_s11 + $0x8] sm:$0xff] }
 0x6e4   : > { %v1452_v27 = vmul.f32 %v1450_v47, %v3332_v62  ;;  %v1230_v47 = vld [vmem:[%s3845_s9 + $0x70] sm:$0xff] }
 0x6e5   : > { %1623 = vmatpush.msra.mxu1 %v1230_v47 }
 0x6e6   : > { %v1456_v48 = vsel %vm1428_vm6, %v1452_v27, 0.0 }
 0x6e7   : > { %1457 = vadd.xlane.f32.xlu2 %v1456_v48 }
 0x6ff   : > { %1570 = vrot.lane.b32.xlu2 %v3296_v46, %s3846_s2  ;;  %s3630_s2 = scalar_lea.vmem %s3805_s19, %s3067_s28  ;;  %s3644_s28 = scalar_lea.vmem [#allocation2], %s2525_s22 }
 0x700   : > { %s2596_s22 = sshll.u32 %s3036_s1, 3 }
 0x701   : > { %s2188_s4 = scalar_lea.hbm %s3801_s15, %s2596_s22 }
 0x702   : > { %s2192_s6 = sshll.u32 %s2188_s4, 4  ;;  %s2193_s6 = int_to_ptr.hbm [resolvable:$true] %s2192_s6 }
 0x703   : > { %s2767_s24 = sshra.s32 %s2193_s6, 4  ;;  %s2768_s24 = int_to_ptr.hbm [resolvable:$true] %s2767_s24 }
 0x704   : > { %s2769_s8 = scalar_lea.hbm %s2768_s24, 8  ;;  %p2774_p0 = scmp.lt.s32.totalorder %s2768_s24, %s3801_s15 }
 0x705   : > { %p2770_p11 = scmp.ne.s32.totalorder %s2768_s24, %s2769_s8 }
 0x707   : > { %1889 = vperm.xlu2 %2678, %v781_v49   ;;  %v1697_v49 = vld [vmem:[%s3850_s10 + $0x20] sm:$0xff]  ;;  %p2771_p12 = pnand %p2770_p11, %p3055_p5 }
 0x709   : > { %p2772_p13 = pneg %p2771_p12 }
 0x737   : > { %v1547_v50 = vpop.xlane.xlu2 %1546 }
 0x738   : > { %2717 = vrcp.f32 %v1547_v50  ;;  %v1793_v50 = vld [vmem:[%s3851_s11 + $0x38] sm:$0xff] }
 0x739   : > { %1837 = vmatpush.msrb.mxu1 %v1793_v50  ;;  %v1878_v50 = vld [vmem:[%s3798_s12 + $0x28] sm:$0xff] }
 0x73e   : > { %v2718_v51 = vpop.eup %2717 }
 0x73f   : > { %v1553_v52 = vmul.f32 %v2718_v51, %v2710_v29  ;;  %v1792_v51 = vld [vmem:[%s3851_s11 + $0x30] sm:$0xff] }
 0x740   : > { %1838 = vmatpush.msrb.mxu1 %v1792_v51  ;;  %v1877_v51 = vld [vmem:[%s3798_s12 + $0x20] sm:$0xff] }
 0x741   : > { %v1555_v53 = vmul.f32 %v1553_v52, %v3326_v57  ;;  %v1791_v52 = vld [vmem:[%s3851_s11 + $0x28] sm:$0xff] }
 0x742   : > { %1839 = vmatpush.msrb.mxu1 %v1791_v52  ;;  %v3560_v52 = vld [vmem:[%s3798_s12 + $0x40] sm:$0xff] }
 0x743   : > { %v1557_v54 = vsel %vm1428_vm6, %v1555_v53, 0.0 }
 0x744   : > { %1558 = vadd.xlane.f32.xlu0 %v1557_v54  ;;  %v2019_v54 = vld [vmem:[%s3799_s13 + $0x38] sm:$0xff] }
 0x74a   : > { %v1550_v55 = vpop.xlane.xlu0 %1549 }
 0x74b   : > { %2719 = vrcp.f32 %v1550_v55  ;;  %v2018_v55 = vld [vmem:[%s3799_s13 + $0x30] sm:$0xff] }
 0x751   : > { %v2720_v46 = vpop.eup %2719 }
 0x752   : > { %v1455_v56 = vpop.xlane.xlu1 %1454  ;;  %v1554_v58 = vmul.f32 %v2720_v46, %v2712_v34  ;;  %v2014_v34 = vld [vmem:[%s3799_s13 + $0x10] sm:$0xff]  ;;  %v2017_v46 = vld [vmem:[%s3799_s13 + $0x28] sm:$0xff] }
 0x753   : > { %v1459_v59 = vadd.f32 1e-13, %v1455_v56 }
 0x754   : > { %v1556_v60 = vmul.f32 %v1554_v58, %v3332_v62  ;;  %v2016_v58 = vld [vmem:[%s3799_s13 + $0x20] sm:$0xff] }
 0x755   : > { %2721 = vrcp.f32 %v1459_v59  ;;  %v3498_v59 = vld [vmem:[%s3850_s10 + $0x40] sm:$0xff] }
 0x756   : > { %v1560_v57 = vsel %vm1428_vm6, %v1556_v60, 0.0 }
 0x757   : > { %1561 = vadd.xlane.f32.xlu1 %v1560_v57 }
 0x758   : > { %1704 = vperm.xlu0 %2676, %v779_v61  }
 0x75a   : > { %v1458_v63 = vpop.xlane.xlu2 %1457 }
 0x75b   : > { %v2722_v0 = vpop.eup %2721  ;;  %v1460_v1 = vadd.f32 1e-13, %v1458_v63  ;;  %v3504_v63 = vld [vmem:[%s3851_s11 + $0x40] sm:$0xff] }
 0x75c   : > { %v3369_v4 = vmul.f32 %v2722_v0, %v1451_v41  ;;  %v1876_v0 = vld [vmem:[%s3798_s12 + $0x18] sm:$0xff] }
 0x75d   : > { %2723 = vrcp.f32 %v1460_v1  ;;  %v1796_v1 = vperm.slane %v3504_v63, 0 }
 0x75e   : > { %2568 = vmatmul.msk.f32.vlgmr.msrb.gmra.mxu2 %vm1428_vm6, %v3369_v4 }
 0x75f   : > { %1913 = vmatpush.msrb.mxu2 %v1876_v0 }
 0x761   : > { %1914 = vmatpush.msrb.mxu2 %v1875_v19 }
 0x762   : > { %v1571_v5 = vpop.permute.xlu2 %1570 }
 0x763   : > { %v2724_v6 = vpop.eup %2723  ;;  %1594 = vmatpush.msra.mxu0 %v1571_v5 }
 0x764   : > { %v3373_v62 = vmul.f32 %v2724_v6, %v1452_v27  ;;  %v1700_v27 = vld [vmem:[%s3850_s10 + $0x38] sm:$0xff] }
 0x765   : > { %1724 = vmatpush.msrb.mxu0 %v1696_v8  ;;  %1749 = vmatpush.msrb.mxu3 %v1700_v27  ;;  %v3514_v8 = vld [vmem:[%s3799_s13 + $0x40] sm:$0xff] }
 0x766   : > { %2569 = vmatmul.msk.f32.gmra.mxu2 %vm1428_vm6, %v3373_v62  ;;  %v2055_v27 = vperm.slane %v3514_v8, 1 }
 0x767   : > { %1725 = vmatpush.msrb.mxu0 %v1695_v9  ;;  %v2023_v9 = vperm.slane %v3514_v8, 0 }
 0x769   : > { %1726 = vmatpush.msrb.mxu0 %v1694_v13 }
 0x76a   : > { %v3449_v43 = vpop.permute.xlu2 %1889 }
 0x76b   : > { %1727 = vmatpush.msrb.mxu0 %v1693_v14  ;;  %v2022_v44 = vmul.f32 %v3449_v43, %v3338_v3  ;;  %v1698_v3 = vld [vmem:[%s3850_s10 + $0x28] sm:$0xff] }
 0x770   : > { %1884 = vperm.xlu1 %2677, %v780_v7  }
 0x7b7   : > { %v1559_v10 = vpop.xlane.xlu0 %1558 }
 0x7b8   : > { %v1563_v11 = vadd.f32 1e-13, %v1559_v10 }
 0x7ba   : > { %2725 = vrcp.f32 %v1563_v11 }
 0x7c0   : > { %v2726_v16 = vpop.eup %2725 }
 0x7c1   : > { %v3393_v17 = vmul.f32 %v2726_v16, %v1555_v53  ;;  %v1790_v53 = vld [vmem:[%s3851_s11 + $0x20] sm:$0xff] }
 0x7c2   : > { %1840 = vmatpush.msrb.mxu1 %v1790_v53  ;;  %v1894_v53 = vperm.slane %v3560_v52, 0 }
 0x7c3   : > { %2573 = vmatmul.msk.f32.vlgmr.msra.gmra.mxu0 %vm1428_vm6, %v3393_v17 }
 0x7c4   : > { %1812 = vmatpush.msra.mxu0 %v1789_v18 }
 0x7c6   : > { %1813 = vmatpush.msra.mxu0 %v1788_v21  ;;  %v1874_v21 = vld [vmem:[%s3798_s12 + $0x8] sm:$0xff] }
 0x7c7   : > { %1915 = vmatpush.msrb.mxu2 %v1874_v21 }
 0x7c8   : > { %1814 = vmatpush.msra.mxu0 %v1787_v23  ;;  %v1873_v23 = vld [vmem:[%s3798_s12] sm:$0xff] }
 0x7c9   : > { %1916 = vmatpush.msrb.mxu2 %v1873_v23 }
 0x7ca   : > { %v1562_v26 = vpop.xlane.xlu1 %1561  ;;  %1815 = vmatpush.msra.mxu0 %v1786_v25  ;;  %v3419_v24 = vpop.permute.xlu0 %1704 }
 0x7cb   : > { %v1564_v22 = vadd.f32 1e-13, %v1562_v26  ;;  %v3424_v32 = vmul.f32 %v3419_v24, %v1178_v31  ;;  %v1795_v37 = vmul.f32 %v3419_v24, %v1679_v36 }
 0x7cd   : > { %2727 = vrcp.f32 %v1564_v22 }
 0x7d3   : > { %v2728_v28 = vpop.eup %2727 }
 0x7d4   : > { %v3412_v29 = vmul.f32 %v2728_v28, %v1556_v60  ;;  %v1708_v60 = vperm.slane %v3498_v59, 0 }
 0x7d6   : > { %2574 = vmatmul.msk.f32.gmra.mxu0 %vm1428_vm6, %v3412_v29 }
 0x7de   : > { %2580 = vmatmul.msk.f32.vlgmr.msrb.gmra.mxu0 %vm807_vm0, %v3424_v32 }
 0x7df   : > { %2042 = vmatpush.msrb.mxu0 %v2015_v33 }
 0x7e1   : > { %v1488_v45 = vpop.f32.mrf.mxu2  ;;  %2043 = vmatpush.msrb.mxu0 %v2014_v34 }
 0x7e2   : > { %2577 = vmatmul.msk.f32.vlgmr.msra.gmra.mxu2 %vm978_vm11, %v1488_v45  ;;  %v3443_v40 = vpop.permute.xlu1 %1884  ;;  %v1821_v45 = vperm.slane %v3504_v63, 1 }
 0x7e3   : > { %2044 = vmatpush.msrb.mxu0 %v2013_v35  ;;  %v2021_v42 = vmul.f32 %v3443_v40, %v3336_v2  ;;  %v1699_v2 = vld [vmem:[%s3850_s10 + $0x30] sm:$0xff]  ;;  %v1733_v35 = vperm.slane %v3498_v59, 1  ;;  %s2773_s10 = scalar_lea.hbm %s3801_s15, 16 }
 0x7e4   : > { %1750 = vmatpush.msrb.mxu3 %v1699_v2  ;;  %p2775_p1 = scmp.lt.s32.totalorder %s2773_s10, %s2769_s8 }
 0x7e5   : > { %2045 = vmatpush.msrb.mxu0 %v2012_v39 }
 0x7e6   : > { %2582 = vmatmul.msk.f32.vlgmr.msra.gmra.mxu0 %vm807_vm0, %v1795_v37  ;;  %1751 = vmatpush.msrb.mxu3 %v1698_v3  ;;  %p2776_p2 = por %p2775_p1, %p2774_p0 }
 0x7e8   : > { %1752 = vmatpush.msrb.mxu3 %v1697_v49  ;;  %v1880_v49 = vld [vmem:[%s3798_s12 + $0x38] sm:$0xff]  ;;  %p2777_p3 = pnand %p2776_p2, %p2772_p13 }
 0x7e9   : > { %v1491_v41 = vpop.f32.mrf.mxu2 }
 0x7ea   : > { %2578 = vmatmul.msk.f32.gmra.mxu2 %vm978_vm11, %v1491_v41  ;;  %1945 = vmatpush.msra.mxu3 %v1880_v49 }
 0x7ee   : > { %2588 = vmatmul.msk.f32.vlgmr.msrb.gmra.mxu0 %vm807_vm0, %v2021_v42 }
 0x7f6   : > { %2589 = vmatmul.msk.f32.gmra.mxu0 %vm807_vm0, %v2022_v44 }
 0x840   : > { %v1596_v48 = vpop.f32.mrf.mxu0 }
 0x841   : > { %2575 = vmatmul.msk.f32.vlgmr.msra.gmra.mxu1 %vm978_vm11, %v1596_v48 }
 0x842   : > { %2074 = vmatpush.msra.mxu1 %v2019_v54 }
 0x844   : > { %2075 = vmatpush.msra.mxu1 %v2018_v55 }
 0x846   : > { %2076 = vmatpush.msra.mxu1 %v2017_v46 }
 0x848   : > { %2077 = vmatpush.msra.mxu1 %v2016_v58 }
 0x853   : > { %v1599_v56 = vpop.f32.mrf.mxu0 }
 0x854   : > { %2576 = vmatmul.msk.f32.gmra.mxu1 %vm978_vm11, %v1599_v56 }
 0x85b   : > { %v1729_v61 = vpop.f32.mrf.mxu0 }
 0x85c   : > { %v1730_v57 = vadd.f32 %v1729_v61, %v1708_v60 }
 0x85e   : > { %2729 = vtanh.f32 %v1730_v57 }
 0x863   : > { %v1817_v5 = vpop.f32.mrf.mxu0 }
 0x864   : > { %v2730_v6 = vpop.eup %2729  ;;  %v1818_v7 = vadd.f32 %v1817_v5, %v1796_v1 }
 0x865   : > { %2581 = vmatmul.msk.f32.vlgmr.msrb.gmra.mxu3 %vm807_vm0, %v2730_v6  ;;  %v1654_v25 = vpop.f32.mrf.mxu2 }
 0x866   : > { %2731 = vtanh.f32 %v1818_v7  ;;  %v1926_v7 = vperm.slane %v3560_v52, 1 }
 0x86b   : > { %v2047_v10 = vpop.f32.mrf.mxu0 }
 0x86c   : > { %v2732_v11 = vpop.eup %2731  ;;  %v2048_v13 = vadd.f32 %v2047_v10, %v2023_v9 }
 0x86d   : > { %2583 = vmatmul.msk.f32.vlgmr.msrb.gmra.mxu1 %vm807_vm0, %v2732_v11  ;;  %v1657_v30 = vpop.f32.mrf.mxu2 }
 0x86e   : > { %2733 = vtanh.f32 %v2048_v13 }
 0x873   : > { %v2050_v14 = vpop.f32.mrf.mxu0 }
 0x874   : > { %v2734_v15 = vpop.eup %2733  ;;  %v2051_v16 = vadd.f32 %v2050_v14, %v2023_v9 }
 0x875   : > { %2590 = vmatmul.msk.f32.vlgmr.msra.gmra.mxu1 %vm807_vm0, %v2734_v15 }
 0x876   : > { %2735 = vtanh.f32 %v2051_v16 }
 0x87c   : > { %v2736_v18 = vpop.eup %2735 }
 0x87d   : > { %2591 = vmatmul.msk.f32.gmra.mxu1 %vm807_vm0, %v2736_v18 }
 0x8be   : > { %v1625_v26 = vpop.f32.mrf.mxu1 }
 0x8bf   : > { %v1655_v22 = vadd.f32 %v1654_v25, %v1625_v26 }
 0x8c1   : > { %v1892_v28 = vmul.f32 %v3443_v40, %v1655_v22 }
 0x8c3   : > { %2584 = vmatmul.msk.f32.vlgmr.msrb.gmra.mxu2 %vm807_vm0, %v1892_v28 }
 0x8d1   : > { %v1628_v31 = vpop.f32.mrf.mxu1 }
 0x8d2   : > { %v1658_v33 = vadd.f32 %v1657_v30, %v1628_v31 }
 0x8d4   : > { %v3532_v34 = vmul.f32 %v3449_v43, %v1658_v33 }
 0x8d6   : > { %2585 = vmatmul.msk.f32.gmra.mxu2 %vm807_vm0, %v3532_v34 }
 0x8e8   : > { %v1754_v39 = vpop.f32.mrf.mxu3 }
 0x8e9   : > { %v1755_v36 = vadd.f32 %v1754_v39, %v1733_v35 }
 0x8ea   : > { %v1842_v37 = vpop.f32.mrf.mxu1 }
 0x8eb   : > { %v1843_v41 = vadd.f32 %v1842_v37, %v1821_v45  ;;  %v1757_v42 = vadd.f32 %v1755_v36, %v3424_v32  ;;  %v1879_v32 = vld [vmem:[%s3798_s12 + $0x30] sm:$0xff] }
 0x8ec   : > { %1946 = vmatpush.msra.mxu3 %v1879_v32 }
 0x8ed   : > { %v1845_v44 = vsel %vm807_vm0, %v1843_v41, 0.0  ;;  %v1758_v47 = vsel %vm807_vm0, %v1757_v42, 0.0 }
 0x8ee   : > { %1846 = vadd.xlane.f32.xlu1 %v1845_v44  ;;  %1759 = vadd.xlane.f32.xlu2 %v1758_v47 }
 0x8ef   : > { %1947 = vmatpush.msra.mxu3 %v1878_v50 }
 0x8f1   : > { %1948 = vmatpush.msra.mxu3 %v1877_v51 }
 0x8f2   : > { %v2079_v2 = vpop.f32.mrf.mxu1 }
 0x8f3   : > { %v2080_v48 = vadd.f32 %v2079_v2, %v2055_v27 }
 0x8f5   : > { %v2085_v3 = vsel %vm807_vm0, %v2080_v48, 0.0 }
 0x8f6   : > { %2086 = vadd.xlane.f32.xlu2 %v2085_v3 }
 0x946   : > { %v1918_v54 = vpop.f32.mrf.mxu2 }
 0x947   : > { %v1919_v55 = vadd.f32 %v1918_v54, %v1894_v53 }
 0x949   : > { %2737 = vtanh.f32 %v1919_v55 }
 0x94f   : > { %v2738_v46 = vpop.eup %2737 }
 0x950   : > { %2586 = vmatmul.msk.f32.vlgmr.msra.gmra.mxu3 %vm807_vm0, %v2738_v46 }
 0x959   : > { %v1921_v56 = vpop.f32.mrf.mxu2 }
 0x95a   : > { %v1922_v58 = vadd.f32 %v1921_v56, %v1894_v53 }
 0x95c   : > { %2739 = vtanh.f32 %v1922_v58 }
 0x961   : > { %v1847_v60 = vpop.xlane.xlu1 %1846  ;;  %v1760_v6 = vpop.xlane.xlu2 %1759 }
 0x962   : > { %v2740_v61 = vpop.eup %2739  ;;  %v1848_v57 = vmul.f32 %v1847_v60, %v3082_v12  ;;  %v1761_v10 = vmul.f32 %v1760_v6, %v3082_v12 }
 0x963   : > { %2587 = vmatmul.msk.f32.gmra.mxu3 %vm807_vm0, %v2740_v61 }
 0x964   : > { %v1849_v0 = vsub.f32 %v1843_v41, %v1848_v57  ;;  %v3571_v15 = vsub.f32 %v1757_v42, %v1761_v10  ;;  %v2082_v41 = vpop.f32.mrf.mxu1 }
 0x965   : > { %v2083_v47 = vadd.f32 %v2082_v41, %v2055_v27  ;;  %v2129_v41 = vperm.slane %v3514_v8, 2 }
 0x966   : > { %v1850_v1 = vmul.f32 %v1849_v0, %v1849_v0  ;;  %v1763_v21 = vmul.f32 %v3571_v15, %v3571_v15 }
 0x967   : > { %v2088_v32 = vsel %vm807_vm0, %v2083_v47, 0.0 }
 0x968   : > { %v1851_v5 = vsel %vm807_vm0, %v1850_v1, 0.0  ;;  %v1764_v22 = vsel %vm807_vm0, %v1763_v21, 0.0 }
 0x969   : > { %1852 = vadd.xlane.f32.xlu2 %v1851_v5  ;;  %v2087_v11 = vpop.xlane.xlu2 %2086 }
 0x96a   : > { %v2091_v18 = vmul.f32 %v2087_v11, %v3082_v12 }
 0x96c   : > { %v3579_v26 = vsub.f32 %v2080_v48, %v2091_v18  ;;  %v1867_v48 = vperm.slane %v3504_v63, 2 }
 0x9d3   : > { %v1950_v9 = vpop.f32.mrf.mxu3 }
 0x9d4   : > { %v1951_v13 = vadd.f32 %v1950_v9, %v1926_v7 }
 0x9d6   : > { %v3569_v14 = vadd.f32 %v1951_v13, %v1892_v28  ;;  %v2095_v28 = vmul.f32 %v3579_v26, %v3579_v26 }
 0x9d8   : > { %v1958_v16 = vsel %vm807_vm0, %v3569_v14, 0.0  ;;  %v2097_v45 = vsel %vm807_vm0, %v2095_v28, 0.0  ;;  %v1782_v28 = vperm.slane %v3498_v59, 3 }
 0x9d9   : > { %1959 = vadd.xlane.f32.xlu0 %v1958_v16 }
 0x9dc   : > { %v1853_v19 = vpop.xlane.xlu2 %1852 }
 0x9dd   : > { %v1854_v23 = vmul.f32 %v1853_v19, %v3082_v12  ;;  %v1780_v19 = vperm.slane %v3498_v59, 2 }
 0x9df   : > { %v1855_v25 = vadd.f32 1e-05, %v1854_v23 }
 0x9e1   : > { %2741 = vrsqrt.f32 %v1855_v25  ;;  %1765 = vadd.xlane.f32.xlu0 %v1764_v22  ;;  %vm1862_vm8 = vweird.f32 %v1855_v25 }
 0x9e6   : > { %v1953_v30 = vpop.f32.mrf.mxu3 }
 0x9e7   : > { %v2742_v31 = vpop.eup %2741  ;;  %v1954_v33 = vadd.f32 %v1953_v30, %v1926_v7 }
 0x9e8   : > { %v1857_v35 = vmul.f32 %v2742_v31, %v1855_v25  ;;  %vm1863_vm7 = vweird.f32 %v2742_v31 }
 0x9e9   : > { %2098 = vadd.xlane.f32.xlu0 %v2097_v45  ;;  %v1957_v39 = vadd.f32 %v1954_v33, %v3532_v34  ;;  %vm1864_vm9 = vmor %vm1862_vm8, %vm1863_vm7  ;;  %v1869_v34 = vperm.slane %v3504_v63, 3 }
 0x9ea   : > { %v1858_v36 = vmul.f32 %v2742_v31, %v1857_v35 }
 0x9eb   : > { %v1961_v37 = vsel %vm807_vm0, %v1957_v39, 0.0 }
 0x9ec   : > { %v1859_v42 = vmul.f32 0.5, %v1858_v36  ;;  %1962 = vadd.xlane.f32.xlu1 %v1961_v37 }
 0x9ee   : > { %v1860_v44 = vsub.f32 1.5, %v1859_v42 }
 0x9f0   : > { %v1861_v2 = vmul.f32 %v2742_v31, %v1860_v44 }
 0x9f2   : > { %v1865_v3 = vsel %vm1864_vm9, %v2742_v31, %v1861_v2  ;;  %v2132_v2 = vperm.slane %v3514_v8, 3 }
 0x9f3   : > { %v1866_v49 = vmul.f32 %v1865_v3, %v1849_v0 }
 0x9f4   : > { %2089 = vadd.xlane.f32.xlu1 %v2088_v32 }
 0x9f5   : > { %v1868_v50 = vmul.f32 %v1867_v48, %v1866_v49 }
 0x9f7   : > { %v1870_v51 = vadd.f32 %v1869_v34, %v1868_v50 }
 0x9f9   : > { %v1871_v27 = vmul.f32 %v1870_v51, %v3419_v24 }
 0x9fb   : > { %1872 = vst.msk [vmem:[%s3599_s25] sm:$0xff] %vm807_vm0, %v1871_v27 }
 0x9fd   : > { %1682 = vrot.lane.b32.xlu0 %v3393_v17, %s3816_s26 }
 0xa4c   : > { %v1960_v63 = vpop.xlane.xlu0 %1959 }
 0xa4d   : > { %v1964_v21 = vmul.f32 %v1960_v63, %v3082_v12 }
 0xa4f   : > { %v3623_v45 = vsub.f32 %v3569_v14, %v1964_v21 }
 0xa54   : > { %v1766_v53 = vpop.xlane.xlu0 %1765 }
 0xa55   : > { %v1767_v54 = vmul.f32 %v1766_v53, %v3082_v12 }
 0xa57   : > { %v1768_v55 = vadd.f32 1e-05, %v1767_v54 }
 0xa59   : > { %2743 = vrsqrt.f32 %v1768_v55  ;;  %vm1775_vm12 = vweird.f32 %v1768_v55 }
 0xa5c   : > { %v2099_v46 = vpop.xlane.xlu0 %2098 }
 0xa5d   : > { %v2103_v56 = vmul.f32 %v2099_v46, %v3082_v12 }
 0xa5f   : > { %v2744_v58 = vpop.eup %2743  ;;  %v2105_v60 = vadd.f32 1e-05, %v2103_v56  ;;  %v1963_v61 = vpop.xlane.xlu1 %1962 }
 0xa60   : > { %v1770_v57 = vmul.f32 %v2744_v58, %v1768_v55  ;;  %v1965_v0 = vmul.f32 %v1963_v61, %v3082_v12  ;;  %vm1776_vm10 = vweird.f32 %v2744_v58 }
 0xa61   : > { %2745 = vrsqrt.f32 %v2105_v60  ;;  %vm1777_vm13 = vmor %vm1775_vm12, %vm1776_vm10  ;;  %vm2113_vm15 = vweird.f32 %v2105_v60 }
 0xa62   : > { %v1771_v1 = vmul.f32 %v2744_v58, %v1770_v57  ;;  %v3608_v5 = vsub.f32 %v1957_v39, %v1965_v0 }
 0xa64   : > { %v1772_v17 = vmul.f32 0.5, %v1771_v1  ;;  %v1969_v6 = vmul.f32 %v3608_v5, %v3608_v5 }
 0xa66   : > { %v1773_v7 = vsub.f32 1.5, %v1772_v17  ;;  %v1973_v9 = vsel %vm807_vm0, %v1969_v6, 0.0 }
 0xa67   : > { %v2746_v10 = vpop.eup %2745  ;;  %v2090_v11 = vpop.xlane.xlu1 %2089  ;;  %1974 = vadd.xlane.f32.xlu2 %v1973_v9 }
 0xa68   : > { %v1774_v13 = vmul.f32 %v2744_v58, %v1773_v7  ;;  %v2108_v16 = vmul.f32 %v2746_v10, %v2105_v60  ;;  %v2092_v18 = vmul.f32 %v2090_v11, %v3082_v12  ;;  %vm2114_vm14 = vweird.f32 %v2746_v10 }
 0xa69   : > { %vm2115_vm1 = vmor %vm2113_vm15, %vm2114_vm14 }
 0xa6a   : > { %v1778_v23 = vsel %vm1777_vm13, %v2744_v58, %v1774_v13  ;;  %v2109_v25 = vmul.f32 %v2746_v10, %v2108_v16  ;;  %v3616_v22 = vsub.f32 %v2083_v47, %v2092_v18  ;;  %v1968_v47 = vmul.f32 %v3623_v45, %v3623_v45 }
 0xa6b   : > { %v1779_v30 = vmul.f32 %v1778_v23, %v3571_v15 }
 0xa6c   : > { %v2110_v31 = vmul.f32 0.5, %v2109_v25  ;;  %v2096_v33 = vmul.f32 %v3616_v22, %v3616_v22 }
 0xa6d   : > { %v1781_v35 = vmul.f32 %v1780_v19, %v1779_v30 }
 0xa6e   : > { %v2111_v39 = vsub.f32 1.5, %v2110_v31  ;;  %v2100_v36 = vsel %vm807_vm0, %v2096_v33, 0.0 }
 0xa6f   : > { %2101 = vadd.xlane.f32.xlu1 %v2100_v36  ;;  %v1683_v59 = vpop.permute.xlu0 %1682  ;;  %v1783_v15 = vadd.f32 %v1782_v28, %v1781_v35 }
 0xa70   : > { %v2112_v37 = vmul.f32 %v2746_v10, %v2111_v39  ;;  %v1688_v14 = vsel %vm1428_vm6, %v3369_v4, %v1683_v59 }
 0xa71   : > { %1691 = vst.msk [vmem:[%s3630_s2] sm:$0xff] %vm978_vm11, %v1688_v14  ;;  %v1784_v42 = vmul.f32 %v1783_v15, %v3419_v24  ;;  %v1970_v24 = vsel %vm807_vm0, %v1968_v47, 0.0 }
 0xa72   : > { %v2116_v44 = vsel %vm2115_vm1, %v2746_v10, %v2112_v37 }
 0xa73   : > { %v2127_v48 = vmul.f32 %v2116_v44, %v3579_v26  ;;  %1785 = vst.msk [vmem:[%s3644_s28] sm:$0xff] %vm807_vm0, %v1784_v42 }
 0xa75   : > { %v2130_v4 = vmul.f32 %v2129_v41, %v2127_v48 }
 0xa77   : > { %v2133_v3 = vadd.f32 %v2132_v2, %v2130_v4  ;;  %1971 = vadd.xlane.f32.xlu1 %v1970_v24 }
 0xa79   : > { %v2135_v34 = vmul.f32 %v2133_v3, %v3443_v40 }
 0xa7b   : > { %2137 = vst.msk [vmem:[%s3657_s21] sm:$0xff] %vm807_vm0, %v2135_v34 }
 0xa7f   : > { %1207 = vrot.lane.b32.xlu2 %v3227_v38, %s2913_s0 }
 0xa80   : > { %2780 = shalt.err (!%p2777_p3)
}
 0xa81   : > { %2612 = dma.vmem_to_hbm [thread:$0]  (%p3055_p5), %s2191_s5, 128, %s2193_s6, %s3668_s7  }
 0xa82   : > { %s2174_s9 = scalar_lea.hbm %s3800_s14, %s2596_s22  ;;  %s2176_s27 = sshll.u32 %s3644_s28, 4  ;;  %s2177_s27 = int_to_ptr.vmem [resolvable:$true] %s2176_s27 }
 0xa83   : > { %s2178_s23 = sshll.u32 %s2174_s9, 4  ;;  %s2140_s11 = scalar_lea.sflag [#allocation3], %s3591_s20  ;;  %s2179_s23 = int_to_ptr.hbm [resolvable:$true] %s2178_s23 }
 0xa84   : > { %s2795_s8 = sshra.s32 %s2179_s23, 4  ;;  %s2801_s5 = scalar_lea.hbm %s3800_s14, 16  ;;  %s2796_s8 = int_to_ptr.hbm [resolvable:$true] %s2795_s8 }
 0xa85   : > { %s2797_s10 = scalar_lea.hbm %s2796_s8, 8  ;;  %p2802_p9 = scmp.lt.s32.totalorder %s2796_s8, %s3800_s14 }
 0xa86   : > { %p2798_p4 = scmp.ne.s32.totalorder %s2796_s8, %s2797_s10  ;;  %p2803_p10 = scmp.lt.s32.totalorder %s2801_s5, %s2797_s10 }
 0xa88   : > { %p2799_p7 = pnand %p2798_p4, %p3055_p5  ;;  %p2804_p11 = por %p2803_p10, %p2802_p9 }
 0xa8a   : > { %p2800_p8 = pneg %p2799_p7 }
 0xa8c   : > { %p2805_p12 = pnand %p2804_p11, %p2800_p8 }
 0xa8e   : > { %2808 = shalt.err (!%p2805_p12)
}
 0xa8f   : > { %2611 = dma.vmem_to_hbm [thread:$0]  (%p3055_p5), %s2177_s27, 128, %s2179_s23, %s2140_s11   ;;  %v2005_v6 = vperm.slane %v3560_v52, 3 }
 0xa90   : > { %s3852_s28 = smov 8   ;;  %s773_s25 = scalar_lea.vmem %s3804_s18, %s3069_s29 }
 0xa91   : > { %1684 = vrot.lane.b32.xlu1 %v3412_v29, %s3852_s28  ;;  %s2609_s29 = sshll.u32 %s3036_s1, 4  ;;  %s3853_s9 = sshll.u32 %s3591_s20, 4 }
 0xa92   : > { %s3716_s27 = scalar_lea.vmem [#allocation6], %s3853_s9  ;;  %s2220_s8 = scalar_lea.hbm %s3803_s17, %s2609_s29 }
 0xa93   : > { %s2221_s1 = sshll.u32 %s3657_s21, 4  ;;  %s2223_s10 = sshll.u32 %s2220_s8, 4  ;;  %s2222_s1 = int_to_ptr.vmem [resolvable:$true] %s2221_s1  ;;  %s2224_s10 = int_to_ptr.hbm [resolvable:$true] %s2223_s10 }
 0xa94   : > { %s2203_s5 = scalar_lea.hbm %s3802_s16, %s2609_s29  ;;  %s2155_s6 = scalar_lea.sflag [#allocation8], %s3591_s20 }
 0xa95   : > { %s2823_s26 = sshra.s32 %s2224_s10, 4  ;;  %s2829_s9 = scalar_lea.hbm %s3803_s17, 32  ;;  %s2824_s26 = int_to_ptr.hbm [resolvable:$true] %s2823_s26 }
 0xa96   : > { %s2825_s22 = scalar_lea.hbm %s2824_s26, 16  ;;  %p2830_p2 = scmp.lt.s32.totalorder %s2824_s26, %s3803_s17 }
 0xa97   : > { %p2826_p13 = scmp.ne.s32.totalorder %s2824_s26, %s2825_s22  ;;  %p2831_p3 = scmp.lt.s32.totalorder %s2829_s9, %s2825_s22 }
 0xa99   : > { %p2827_p0 = pnand %p2826_p13, %p3055_p5  ;;  %p2832_p4 = por %p2831_p3, %p2830_p2 }
 0xa9b   : > { %p2828_p1 = pneg %p2827_p0 }
 0xa9d   : > { %p2833_p7 = pnand %p2832_p4, %p2828_p1 }
 0xada   : > { %v1975_v38 = vpop.xlane.xlu2 %1974 }
 0xadb   : > { %v1977_v26 = vmul.f32 %v1975_v38, %v3082_v12 }
 0xadd   : > { %v1979_v49 = vadd.f32 1e-05, %v1977_v26 }
 0xadf   : > { %2747 = vrsqrt.f32 %v1979_v49  ;;  %vm1996_vm3 = vweird.f32 %v1979_v49 }
 0xae2   : > { %v2102_v32 = vpop.xlane.xlu1 %2101  ;;  %v1208_v50 = vpop.permute.xlu2 %1207 }
 0xae3   : > { %v2104_v51 = vmul.f32 %v2102_v32, %v3082_v12  ;;  %v1210_v27 = vsel %vm978_vm11, %v3203_v20, %v1208_v50  ;;  %v2002_v20 = vperm.slane %v3560_v52, 2 }
 0xae4   : > { %1690 = vst.msk [vmem:[%s773_s25] sm:$0xff] %vm807_vm0, %v1210_v27 }
 0xae5   : > { %v2748_v63 = vpop.eup %2747  ;;  %v2106_v29 = vadd.f32 1e-05, %v2104_v51 }
 0xae6   : > { %v1991_v53 = vmul.f32 %v2748_v63, %v1979_v49  ;;  %vm1997_vm2 = vweird.f32 %v2748_v63 }
 0xae7   : > { %2749 = vrsqrt.f32 %v2106_v29  ;;  %vm1998_vm4 = vmor %vm1996_vm3, %vm1997_vm2  ;;  %vm2123_vm7 = vweird.f32 %v2106_v29 }
 0xae8   : > { %v1992_v54 = vmul.f32 %v2748_v63, %v1991_v53 }
 0xaea   : > { %v1993_v55 = vmul.f32 0.5, %v1992_v54  ;;  %v1972_v46 = vpop.xlane.xlu1 %1971 }
 0xaeb   : > { %v1976_v56 = vmul.f32 %v1972_v46, %v3082_v12 }
 0xaec   : > { %v1994_v58 = vsub.f32 1.5, %v1993_v55 }
 0xaed   : > { %v2750_v60 = vpop.eup %2749  ;;  %v1978_v61 = vadd.f32 1e-05, %v1976_v56 }
 0xaee   : > { %v1995_v57 = vmul.f32 %v2748_v63, %v1994_v58  ;;  %v2118_v0 = vmul.f32 %v2750_v60, %v2106_v29  ;;  %vm2124_vm5 = vweird.f32 %v2750_v60 }
 0xaef   : > { %2751 = vrsqrt.f32 %v1978_v61  ;;  %vm2125_vm8 = vmor %vm2123_vm7, %vm2124_vm5  ;;  %vm1986_vm10 = vweird.f32 %v1978_v61 }
 0xaf0   : > { %v1999_v1 = vsel %vm1998_vm4, %v2748_v63, %v1995_v57  ;;  %v2119_v17 = vmul.f32 %v2750_v60, %v2118_v0 }
 0xaf1   : > { %v2001_v7 = vmul.f32 %v1999_v1, %v3608_v5 }
 0xaf2   : > { %v2120_v12 = vmul.f32 0.5, %v2119_v17 }
 0xaf3   : > { %v2004_v9 = vmul.f32 %v2002_v20, %v2001_v7 }
 0xaf4   : > { %v2121_v10 = vsub.f32 1.5, %v2120_v12 }
 0xaf5   : > { %v2752_v11 = vpop.eup %2751  ;;  %v2007_v13 = vadd.f32 %v2005_v6, %v2004_v9 }
 0xaf6   : > { %v2122_v16 = vmul.f32 %v2750_v60, %v2121_v10  ;;  %v1981_v18 = vmul.f32 %v2752_v11, %v1978_v61  ;;  %vm1987_vm9 = vweird.f32 %v2752_v11 }
 0xaf7   : > { %v2009_v19 = vmul.f32 %v2007_v13, %v3449_v43  ;;  %vm1988_vm12 = vmor %vm1986_vm10, %vm1987_vm9 }
 0xaf8   : > { %v2126_v21 = vsel %vm2125_vm8, %v2750_v60, %v2122_v16  ;;  %v1982_v23 = vmul.f32 %v2752_v11, %v1981_v18 }
 0xaf9   : > { %v2128_v52 = vmul.f32 %v2126_v21, %v3616_v22  ;;  %2011 = vst.msk [vmem:[%s3716_s27 + $0x8] sm:$0xff] %vm807_vm0, %v2009_v19 }
 0xafa   : > { %v1983_v5 = vmul.f32 0.5, %v1982_v23 }
 0xafb   : > { %v2131_v25 = vmul.f32 %v2129_v41, %v2128_v52 }
 0xafc   : > { %v1984_v28 = vsub.f32 1.5, %v1983_v5 }
 0xafd   : > { %v2134_v22 = vadd.f32 %v2132_v2, %v2131_v25 }
 0xafe   : > { %v1985_v30 = vmul.f32 %v2752_v11, %v1984_v28 }
 0xaff   : > { %v2136_v31 = vmul.f32 %v2134_v22, %v3449_v43 }
 0xb00   : > { %v1989_v33 = vsel %vm1988_vm12, %v2752_v11, %v1985_v30 }
 0xb01   : > { %v2000_v35 = vmul.f32 %v1989_v33, %v3623_v45  ;;  %2138 = vst.msk [vmem:[%s3657_s21 + $0x8] sm:$0xff] %vm807_vm0, %v2136_v31 }
 0xb03   : > { %v1685_v39 = vpop.permute.xlu1 %1684 }
 0xb04   : > { %2836 = shalt.err (!%p2833_p7)
}
 0xb05   : > { %s2914_s20 = smov 128   ;;  %v2003_v43 = vmul.f32 %v2002_v20, %v2000_v35  ;;  %v1689_v8 = vsel %vm1428_vm6, %v3373_v62, %v1685_v39  ;;  %s2204_s21 = sshll.u32 %s3716_s27, 4  ;;  %s2205_s21 = int_to_ptr.vmem [resolvable:$true] %s2204_s21 }
 0xb06   : > { %2614 = dma.vmem_to_hbm [thread:$0]  (%p3055_p5), %s2222_s1, 256, %s2224_s10, %s2155_s6, %s2914_s20, %s2914_s20, %s3852_s28  }
 0xb07   : > { %1692 = vst.msk [vmem:[%s3630_s2 + $0x8] sm:$0xff] %vm978_vm11, %v1689_v8  ;;  %s2206_s29 = sshll.u32 %s2203_s5, 4  ;;  %v2006_v45 = vadd.f32 %v2005_v6, %v2003_v43  ;;  %s2857_s2 = scalar_lea.hbm %s3802_s16, 32  ;;  %s2207_s29 = int_to_ptr.hbm [resolvable:$true] %s2206_s29 }
 0xb08   : > { %s2851_s8 = sshra.s32 %s2207_s29, 4  ;;  %s2852_s8 = int_to_ptr.hbm [resolvable:$true] %s2851_s8 }
 0xb09   : > { %v2008_v36 = vmul.f32 %v2006_v45, %v3443_v40  ;;  %s2853_s24 = scalar_lea.hbm %s2852_s8, 16  ;;  %p2858_p11 = scmp.lt.s32.totalorder %s2852_s8, %s3802_s16 }
 0xb0a   : > { %p2854_p8 = scmp.ne.s32.totalorder %s2852_s8, %s2853_s24  ;;  %p2859_p12 = scmp.lt.s32.totalorder %s2857_s2, %s2853_s24 }
 0xb0b   : > { %2010 = vst.msk [vmem:[%s3716_s27] sm:$0xff] %vm807_vm0, %v2008_v36 }
 0xb0c   : > { %p2855_p9 = pnand %p2854_p8, %p3055_p5  ;;  %p2860_p13 = por %p2859_p12, %p2858_p11 }
 0xb0e   : > { %p2856_p10 = pneg %p2855_p9 }
 0xb10   : > { %p2861_p0 = pnand %p2860_p13, %p2856_p10 }
 0xb12   : > { %2864 = shalt.err (!%p2861_p0)
}
 0xb13   : > { %2613 = dma.vmem_to_hbm [thread:$0]  (%p3055_p5), %s2205_s21, 256, %s2207_s29, %s3668_s7, %s2914_s20, %s2914_s20, %s3852_s28  }
 0xb14 PF: > { %s3854_s27 = sld [smem:[#allocation14_spill]] }
 0xb15   : > { %s3855_s6 = sld [smem:[#allocation12_spill]] }
 0xb1a   : > { %p2632_p1 = scmp.ge.s32.totalorder %s3854_s27, 2 }
 0xb1b   : > { %s2244_s22 = sand.u32 1, %s3855_s6  }
 0xb1c   : > { %p2620_p2 = pnand %p2632_p1, %p3059_p6  ;;  %s2245_s4 = scalar_lea.sflag [#allocation3], %s2244_s22 }
 0xb1e   : > { %p2621_p3 = pneg %p2620_p2 }
 0xb20   : > { %2882 = dma.done.wait (%p2621_p3), %s2245_s4, 128  }
 0xb21   : > { %2884 = vsyncadd (%p2621_p3), %s2245_s4, 4294967168  ;;  %s3857_s25 = sadd.s32 4294967294, %s3854_s27  }
 0xb22   : > { %s2254_s9 = sand.u32 1, %s3857_s25  }
 0xb23   : > { %s2255_s23 = scalar_lea.sflag [#allocation5], %s2254_s9 }
 0xb24   : > { %2886 = dma.done.wait (%p2621_p3), %s2255_s23, 384  }
 0xb25   : > { %2888 = vsyncadd (%p2621_p3), %s2255_s23, 4294966912  ;;  %s2275_s3 = scalar_lea.sflag [#allocation8], %s2244_s22 }
 0xb26   : > { %2890 = dma.done.wait (%p2621_p3), %s2275_s3, 256  }
 0xb27   : > { %2892 = vsyncadd (%p2621_p3), %s2275_s3, 4294967040  ;;  %s3858_s21 = sld [smem:[#allocation15_spill]]  ;;  %s3861_s0 = smov %s2899_s30 }
 0xb28   : > { %s3859_s7 = sld [smem:[#allocation13_spill]] }
 0xb29   : > { %s3860_s20 = sld [smem:[#allocation16_spill]] }
 0xb2d   : > { %p36_p5 = scmp.ge.s32.totalorder %s3858_s21, 4  }
 0xb2e   : > { %s3862_s30 = smov %s3859_s7 }
 0xb2f   :  { %38 = sbr.rel (!%p36_p5) target bundleno = 20 (0x14), region = 205 }
 0xb34   :  { %2296 = vsyncpa [#allocation3], 1 }
 0xb35   :  { %2298 = vsyncpa [#allocation3 + $0x1], 1 }
 0xb36   :  { %2299 = vsyncpa [#allocation5], 1 }
 0xb37   :  { %2301 = vsyncpa [#allocation5 + $0x1], 1 }
 0xb38   :  { %2302 = vsyncpa [#allocation8], 1 }
 0xb39   :  { %2304 = vsyncpa [#allocation8 + $0x1], 1 }

</bundles_post_ra>
